<compile_context>
chip_gen: v6e
topology: v6e:2x2x1
jax: 0.10.0
libtpu: 0.0.40
codegen_flags: <defaults>
</compile_context>

<pallas_src>
import jax
import jax.numpy as jnp
from jax.experimental import pallas as pl
from jax.experimental.pallas import tpu as pltpu

D_IN = 1000                     # matmul1 K (kept at 1000 -- see header note)
D_H1, D_H1_P = 500, 512         # hidden1, padded
D_H2, D_H2_P = 100, 128         # hidden2, padded (lane-dense)
D_OUT, D_OUT_P = 6, 128         # output, padded (lane-dense store)
BN_EPS = 1e-5
TILE_B_MAX = 1024               # batch tile upper bound (review: 256 was too small)


def _round_up(n, m):
    return ((n + m - 1) // m) * m


def _choose_tile_b(B):
    """Batch tile: multiple of 16, <= TILE_B_MAX, and >= 2 grid steps of >= 256
    rows whenever the batch is big enough (feeds both TensorCores on v7x)."""
    b16 = _round_up(B, 16)
    if b16 <= 256:
        return b16                          # small batch: one small tile
    if b16 <= TILE_B_MAX:
        return max(256, _round_up((b16 + 1) // 2, 256))
    return TILE_B_MAX


def mynet_kernel(x_ref, w1_ref, b1_ref, w2_ref, b2_ref, w3_ref, b3_ref, o_ref):
    # x arrives as f32 (single HBM read at 4 B/elem); cast to bf16 in VMEM for
    # the MXU.  All matmuls accumulate in f32 via preferred_element_type.
    x = x_ref[...].astype(jnp.bfloat16)                       # [tile_b, 1000]

    # Linear(1000, 512-padded) + ReLU
    h1 = jnp.dot(x, w1_ref[...], preferred_element_type=jnp.float32) + b1_ref[...]
    h1 = jnp.maximum(h1, 0.0).astype(jnp.bfloat16)            # [tile_b, 512]

    # BatchNorm1d(500) folded into w2/b2 (exact in eval mode).
    # Linear(512-padded, 128-padded); Dropout(p=0.5) is identity in eval; ReLU.
    h2 = jnp.dot(h1, w2_ref[...], preferred_element_type=jnp.float32) + b2_ref[...]
    h2 = jnp.maximum(h2, 0.0).astype(jnp.bfloat16)            # [tile_b, 128]

    # Linear(128-padded, 128-padded); true output lives in columns [:6].
    acc = jnp.dot(h2, w3_ref[...], preferred_element_type=jnp.float32) + b3_ref[...]
    o_ref[...] = acc.astype(o_ref.dtype)                      # bf16 lane-dense store


def mynet_forward(x, packed_params):
    """x: [B, 1000] float32 -> [B, 6] float32 (eval-mode forward)."""
    B = x.shape[0]
    (w1, b1, w2, b2, w3, b3) = packed_params

    tile_b = _choose_tile_b(B)
    b_pad = _round_up(B, tile_b)

    # x stays f32 (in-kernel bf16 cast); only pad batch rows if needed.
    if b_pad != B:
        x = jnp.pad(x, ((0, b_pad - B), (0, 0)))

    grid = (b_pad // tile_b,)

    # Weights/biases: constant block index -> VMEM-resident across batch steps.
    const2d = lambda shape: pl.BlockSpec(shape, lambda i: (0, 0))

    out_padded = pl.pallas_call(
        mynet_kernel,
        out_shape=jax.ShapeDtypeStruct((b_pad, D_OUT_P), jnp.bfloat16),
        grid=grid,
        in_specs=[
            pl.BlockSpec((tile_b, D_IN), lambda i: (i, 0)),   # x (batch-tiled, f32)
            const2d((D_IN, D_H1_P)),                          # w1 (padded N)
            const2d((1, D_H1_P)),                             # b1 (padded)
            const2d((D_H1_P, D_H2_P)),                        # w2 (BN-folded, padded)
            const2d((1, D_H2_P)),                             # b2 (BN-folded, padded)
            const2d((D_H2_P, D_OUT_P)),                       # w3 (padded)
            const2d((1, D_OUT_P)),                            # b3 (padded)
        ],
        out_specs=pl.BlockSpec((tile_b, D_OUT_P), lambda i: (i, 0)),
        compiler_params=pltpu.CompilerParams(
            dimension_semantics=("parallel",),
            vmem_limit_bytes=32 << 20,
        ),
    )(x, w1, b1, w2, b2, w3, b3)

    return out_padded[:B, :D_OUT].astype(jnp.float32)


def prepare_params(raw):
    """Fold BN into Linear2, pad narrow/ragged dims, cast weights to bf16."""
    (w1, b1, gamma, beta, running_mean, running_var, w2, b2, w3, b3) = raw

    # Exact eval-mode BN fold (done in f32): y = (h*scale + shift) @ w2 + b2
    #                                          =  h @ (scale[:,None]*w2) + (shift @ w2 + b2)
    bn_scale = gamma / jnp.sqrt(running_var + BN_EPS)          # [500]
    bn_shift = beta - running_mean * bn_scale                  # [500]
    w2f = w2 * bn_scale[:, None]                               # [500, 100]
    b2f = b2 + bn_shift[None, :] @ w2                          # [1, 100]

    # Zero-pad: 500 -> 512 (w1 cols, b1, w2 rows), 100 -> 128, 6 -> 128.
    w1p = jnp.pad(w1, ((0, 0), (0, D_H1_P - D_H1)))
    b1p = jnp.pad(b1, ((0, 0), (0, D_H1_P - D_H1)))
    w2p = jnp.pad(w2f, ((0, D_H1_P - D_H1), (0, D_H2_P - D_H2)))
    b2p = jnp.pad(b2f, ((0, 0), (0, D_H2_P - D_H2)))
    w3p = jnp.pad(w3, ((0, D_H2_P - D_H2), (0, D_OUT_P - D_OUT)))
    b3p = jnp.pad(b3, ((0, 0), (0, D_OUT_P - D_OUT)))

    return (
        w1p.astype(jnp.bfloat16),
        b1p.astype(jnp.float32),
        w2p.astype(jnp.bfloat16),
        b2p.astype(jnp.float32),
        w3p.astype(jnp.bfloat16),
        b3p.astype(jnp.float32),
    )


def mynet_reference(x, raw):
    """Pure-JAX f32 reference of the PyTorch eval-mode forward."""
    (w1, b1, gamma, beta, rm, rv, w2, b2, w3, b3) = raw
    h = jnp.maximum(x @ w1 + b1, 0.0)
    h = (h - rm) / jnp.sqrt(rv + BN_EPS) * gamma + beta
    h = jnp.maximum(h @ w2 + b2, 0.0)        # Dropout = identity in eval
    return h @ w3 + b3


def init_params(key):
    """Deterministic synthetic params matching the PyTorch module (f32)."""
    ks = jax.random.split(key, 6)

    def linear(kw, kb, d_in, d_out):
        bound = 1.0 / jnp.sqrt(d_in)
        # stored as [in, out] so the kernel computes x @ W
        w = jax.random.uniform(kw, (d_in, d_out), jnp.float32, -bound, bound)
        b = jax.random.uniform(kb, (1, d_out), jnp.float32, -bound, bound)
        return w, b

    w1, b1 = linear(ks[0], ks[1], D_IN, D_H1)
    w2, b2 = linear(ks[2], ks[3], D_H1, D_H2)
    w3, b3 = linear(ks[4], ks[5], D_H2, D_OUT)

    # BatchNorm1d(500) defaults: gamma=1, beta=0, running_mean=0, running_var=1
    gamma = jnp.ones((D_H1,), jnp.float32)
    beta = jnp.zeros((D_H1,), jnp.float32)
    running_mean = jnp.zeros((D_H1,), jnp.float32)
    running_var = jnp.ones((D_H1,), jnp.float32)

    return (w1, b1, gamma, beta, running_mean, running_var, w2, b2, w3, b3)


if __name__ == "__main__":
    key = jax.random.PRNGKey(0)
    k_x, k_p = jax.random.split(key)

    B = 8
    x = jax.random.normal(k_x, (B, D_IN), jnp.float32)
    raw = init_params(k_p)
    packed = prepare_params(raw)

    forward = jax.jit(mynet_forward)
    out = forward(x, packed)
    jax.block_until_ready(out)

    assert out.shape == (B, D_OUT), out.shape
    assert out.dtype == jnp.float32, out.dtype
    assert bool(jnp.all(jnp.isfinite(out)))

    # Loose tolerance: bf16 weights/activations vs the f32 reference.
    ref = mynet_reference(x, raw)
    max_err = float(jnp.max(jnp.abs(out - ref)))
    assert max_err < 1e-1, f"max abs error vs f32 reference: {max_err}"

    print("KERNEL_OK")
</pallas_src>

<mosaic_0001>
module attributes {stable_mosaic.version = 11 : i64} {
  func.func @mynet_kernel(%arg0: i32, %arg1: memref<16x1000xf32, #tpu.memory_space<vmem>>, %arg2: memref<1000x512xbf16, #tpu.memory_space<vmem>>, %arg3: memref<1x512xf32, #tpu.memory_space<vmem>>, %arg4: memref<512x128xbf16, #tpu.memory_space<vmem>>, %arg5: memref<1x128xf32, #tpu.memory_space<vmem>>, %arg6: memref<128x128xbf16, #tpu.memory_space<vmem>>, %arg7: memref<1x128xf32, #tpu.memory_space<vmem>>, %arg8: memref<16x128xbf16, #tpu.memory_space<vmem>>) attributes {dimension_semantics = [#tpu.dimension_semantics<parallel>], iteration_bounds = array<i64: 1>, scalar_prefetch = 0 : i64, scratch_operands = 0 : i64, tpu.core_type = #tpu.core_type<tc>, window_params = [{transform_indices = @transform_0, window_bounds = array<i64: 16, 1000>}, {pipeline_mode = #tpu.pipeline_mode<synchronous>, transform_indices = @transform_1, window_bounds = array<i64: 1000, 512>}, {pipeline_mode = #tpu.pipeline_mode<synchronous>, transform_indices = @transform_2, window_bounds = array<i64: 1, 512>}, {pipeline_mode = #tpu.pipeline_mode<synchronous>, transform_indices = @transform_3, window_bounds = array<i64: 512, 128>}, {pipeline_mode = #tpu.pipeline_mode<synchronous>, transform_indices = @transform_4, window_bounds = array<i64: 1, 128>}, {pipeline_mode = #tpu.pipeline_mode<synchronous>, transform_indices = @transform_5, window_bounds = array<i64: 128, 128>}, {pipeline_mode = #tpu.pipeline_mode<synchronous>, transform_indices = @transform_6, window_bounds = array<i64: 1, 128>}, {transform_indices = @transform_7, window_bounds = array<i64: 16, 128>}]} {
    %c0 = arith.constant 0 : index
    %c0_0 = arith.constant 0 : index
    %0 = vector.load %arg1[%c0, %c0_0] : memref<16x1000xf32, #tpu.memory_space<vmem>>, vector<16x1000xf32>
    %1 = arith.truncf %0 : vector<16x1000xf32> to vector<16x1000xbf16>
    %c0_1 = arith.constant 0 : index
    %c0_2 = arith.constant 0 : index
    %2 = vector.load %arg2[%c0_1, %c0_2] : memref<1000x512xbf16, #tpu.memory_space<vmem>>, vector<1000x512xbf16>
    %cst = arith.constant dense<0.000000e+00> : vector<16x512xf32>
    %3 = tpu.matmul %1, %2, %cst {dimension_numbers = #tpu.dot_dimension_numbers<[1], [0], [0], [1], [0, 0, 1, 1], [], []>} : vector<16x1000xbf16>, vector<1000x512xbf16>, vector<16x512xf32> -> vector<16x512xf32>
    %c0_3 = arith.constant 0 : index
    %c0_4 = arith.constant 0 : index
    %4 = vector.load %arg3[%c0_3, %c0_4] : memref<1x512xf32, #tpu.memory_space<vmem>>, vector<1x512xf32>
    %5 = vector.broadcast %4 : vector<1x512xf32> to vector<16x512xf32>
    %6 = arith.addf %3, %5 : vector<16x512xf32>
    %cst_5 = arith.constant 0.000000e+00 : f32
    %7 = vector.broadcast %cst_5 : f32 to vector<16x512xf32>
    %8 = arith.maximumf %6, %7 : vector<16x512xf32>
    %9 = arith.truncf %8 : vector<16x512xf32> to vector<16x512xbf16>
    %c0_6 = arith.constant 0 : index
    %c0_7 = arith.constant 0 : index
    %10 = vector.load %arg4[%c0_6, %c0_7] : memref<512x128xbf16, #tpu.memory_space<vmem>>, vector<512x128xbf16>
    %cst_8 = arith.constant dense<0.000000e+00> : vector<16x128xf32>
    %11 = tpu.matmul %9, %10, %cst_8 {dimension_numbers = #tpu.dot_dimension_numbers<[1], [0], [0], [1], [0, 0, 1, 1], [], []>} : vector<16x512xbf16>, vector<512x128xbf16>, vector<16x128xf32> -> vector<16x128xf32>
    %c0_9 = arith.constant 0 : index
    %c0_10 = arith.constant 0 : index
    %12 = vector.load %arg5[%c0_9, %c0_10] : memref<1x128xf32, #tpu.memory_space<vmem>>, vector<1x128xf32>
    %13 = vector.broadcast %12 : vector<1x128xf32> to vector<16x128xf32>
    %14 = arith.addf %11, %13 : vector<16x128xf32>
    %cst_11 = arith.constant 0.000000e+00 : f32
    %15 = vector.broadcast %cst_11 : f32 to vector<16x128xf32>
    %16 = arith.maximumf %14, %15 : vector<16x128xf32>
    %17 = arith.truncf %16 : vector<16x128xf32> to vector<16x128xbf16>
    %c0_12 = arith.constant 0 : index
    %c0_13 = arith.constant 0 : index
    %18 = vector.load %arg6[%c0_12, %c0_13] : memref<128x128xbf16, #tpu.memory_space<vmem>>, vector<128x128xbf16>
    %cst_14 = arith.constant dense<0.000000e+00> : vector<16x128xf32>
    %19 = tpu.matmul %17, %18, %cst_14 {dimension_numbers = #tpu.dot_dimension_numbers<[1], [0], [0], [1], [0, 0, 1, 1], [], []>} : vector<16x128xbf16>, vector<128x128xbf16>, vector<16x128xf32> -> vector<16x128xf32>
    %c0_15 = arith.constant 0 : index
    %c0_16 = arith.constant 0 : index
    %20 = vector.load %arg7[%c0_15, %c0_16] : memref<1x128xf32, #tpu.memory_space<vmem>>, vector<1x128xf32>
    %21 = vector.broadcast %20 : vector<1x128xf32> to vector<16x128xf32>
    %22 = arith.addf %19, %21 : vector<16x128xf32>
    %23 = arith.truncf %22 : vector<16x128xf32> to vector<16x128xbf16>
    %c0_17 = arith.constant 0 : index
    %c0_18 = arith.constant 0 : index
    %24 = vector.load %arg8[%c0_17, %c0_18] : memref<16x128xbf16, #tpu.memory_space<vmem>>, vector<16x128xbf16>
    tpu.vector_store %arg8[%c0_17, %c0_18], %23 {strides = array<i32>} : memref<16x128xbf16, #tpu.memory_space<vmem>>, vector<16x128xbf16>,
    return
  }
  func.func @transform_0(%arg0: i32) -> (i32, i32) {
    %c0_i32 = arith.constant 0 : i32
    %c0_i32_0 = arith.constant 0 : i32
    return %arg0, %c0_i32 : i32, i32
  }
  func.func @transform_1(%arg0: i32) -> (i32, i32) {
    %c0_i32 = arith.constant 0 : i32
    %c0_i32_0 = arith.constant 0 : i32
    %c0_i32_1 = arith.constant 0 : i32
    return %c0_i32, %c0_i32_0 : i32, i32
  }
  func.func @transform_2(%arg0: i32) -> (i32, i32) {
    %c0_i32 = arith.constant 0 : i32
    %c0_i32_0 = arith.constant 0 : i32
    %c0_i32_1 = arith.constant 0 : i32
    return %c0_i32, %c0_i32_0 : i32, i32
  }
  func.func @transform_3(%arg0: i32) -> (i32, i32) {
    %c0_i32 = arith.constant 0 : i32
    %c0_i32_0 = arith.constant 0 : i32
    %c0_i32_1 = arith.constant 0 : i32
    return %c0_i32, %c0_i32_0 : i32, i32
  }
  func.func @transform_4(%arg0: i32) -> (i32, i32) {
    %c0_i32 = arith.constant 0 : i32
    %c0_i32_0 = arith.constant 0 : i32
    %c0_i32_1 = arith.constant 0 : i32
    return %c0_i32, %c0_i32_0 : i32, i32
  }
  func.func @transform_5(%arg0: i32) -> (i32, i32) {
    %c0_i32 = arith.constant 0 : i32
    %c0_i32_0 = arith.constant 0 : i32
    %c0_i32_1 = arith.constant 0 : i32
    return %c0_i32, %c0_i32_0 : i32, i32
  }
  func.func @transform_6(%arg0: i32) -> (i32, i32) {
    %c0_i32 = arith.constant 0 : i32
    %c0_i32_0 = arith.constant 0 : i32
    %c0_i32_1 = arith.constant 0 : i32
    return %c0_i32, %c0_i32_0 : i32, i32
  }
  func.func @transform_7(%arg0: i32) -> (i32, i32) {
    %c0_i32 = arith.constant 0 : i32
    %c0_i32_0 = arith.constant 0 : i32
    return %arg0, %c0_i32 : i32, i32
  }
}

</mosaic_0001>

<bundles_post_ra>
// kernel: mynet_forward.1
= control target key start
LH: loop header
LB: loop body
LE: loop exit
PB: predicated region body
PF: predicated region fallthrough
CT: control target
= control target key end

     0   :  { %12 = vsyncpa [#allocation3], 0  ;;  %s3495_s0 = inlined_call_operand.vmem [shape: f32[16,1000], index: 0, kind: input, shape index: {}]   ;;  %s3496_s1 = inlined_call_operand.hbm [shape: bf16[1000,512], index: 1, kind: input, shape index: {}]   ;;  %s3497_s2 = inlined_call_operand.vmem [shape: f32[1,512], index: 2, kind: input, shape index: {}]   ;;  %s3498_s3 = inlined_call_operand.hbm [shape: bf16[512,128], index: 3, kind: input, shape index: {}]   ;;  %s3499_s4 = inlined_call_operand.vmem [shape: f32[1,128], index: 4, kind: input, shape index: {}]   ;;  %s3500_s5 = inlined_call_operand.vmem [shape: bf16[128,128], index: 5, kind: input, shape index: {}]   ;;  %s3501_s6 = inlined_call_operand.vmem [shape: f32[1,128], index: 6, kind: input, shape index: {}]   ;;  %s3502_s7 = inlined_call_operand.vmem [shape: bf16[16,128], index: 7, kind: output, shape index: {}]  }
   0x1   :  { %13 = vsyncpa [#allocation5], 0  ;;  %s3298_s24 = smov [#allocation2]  }
   0x2   :  { %s21_s25 = sshll.u32 %s3298_s24, 4  ;;  %s22_s25 = int_to_ptr.vmem [resolvable:$true] %s21_s25 }
   0x3   :  { %s3262_s26 = scalar_lea.vmem %s22_s25, 32000  ;;  %p3267_p1 = scmp.lt.s32.totalorder %s22_s25, %s22_s25 }
   0x4   :  { %p3263_p0 = scmp.ne.s32.totalorder %s22_s25, %s3262_s26  ;;  %p3268_p2 = scmp.lt.s32.totalorder %s3262_s26, %s3262_s26 }
   0x6   :  { %p3269_p3 = por %p3268_p2, %p3267_p1 }
   0x8   :  { %p3270_p4 = pnand %p3269_p3, %p3263_p0 }
   0xa   :  { %3273 = shalt.err (!%p3270_p4)
}
   0xb   :  { %s3299_s27 = smov 256   ;;  %s3300_s28 = smov 16  }
   0xc   :  { %27 = dma.hbm_to_vmem [thread:$0]  %s3496_s1, 32000, %s22_s25, [#allocation3], %s3299_s27, %s3299_s27, %s3300_s28  }
   0xd   :  { %s3301_s8 = smov [#allocation4]  }
   0xe   :  { %s35_s9 = sshll.u32 %s3301_s8, 4  ;;  %s36_s9 = int_to_ptr.vmem [resolvable:$true] %s35_s9 }
   0xf   :  { %s3282_s10 = scalar_lea.vmem %s36_s9, 4096  ;;  %p3287_p6 = scmp.lt.s32.totalorder %s36_s9, %s36_s9 }
  0x10   :  { %p3283_p5 = scmp.ne.s32.totalorder %s36_s9, %s3282_s10  ;;  %p3288_p7 = scmp.lt.s32.totalorder %s3282_s10, %s3282_s10 }
  0x12   :  { %p3289_p8 = por %p3288_p7, %p3287_p6 }
  0x14   :  { %p3290_p9 = pnand %p3289_p8, %p3283_p5 }
  0x16   :  { %3293 = shalt.err (!%p3290_p9)
}
  0x17   :  { %s3302_s11 = smov 64   ;;  %s3303_s12 = smov 4  }
  0x18   :  { %41 = dma.hbm_to_vmem [thread:$0]  %s3498_s3, 4096, %s36_s9, [#allocation5], %s3302_s11, %s3302_s11, %s3303_s12  }
  0x19   :  { %3294 = dma.done.wait [#allocation3], 32000  }
  0x1a   :  { %3295 = vsyncadd [#allocation3], 4294935296 }
  0x1b   :  { %3296 = dma.done.wait [#allocation5], 4096  }
  0x1c   :  { %3297 = vsyncadd [#allocation5], 4294963200  ;;  %v2838_v0 = vld [vmem:[#allocation2 + $0xe4] ss:$16 sps:$4 sm:$0xff]   ;;  %v2842_v2 = vld [vmem:[#allocation2 + $0xe0] ss:$16 sps:$4 sm:$0xff]  }
  0x1d   :  { %v2840_v1 = vld [vmem:[#allocation2 + $0x2e4] ss:$16 sps:$4 sm:$0xff]   ;;  %1618 = vmatprep.subr.bf16.mxu0 %v2838_v0  ;;  %v2843_v3 = vld [vmem:[#allocation2 + $0x2e0] ss:$16 sps:$4 sm:$0xff]   ;;  %v56_v46 = vld [vmem:[%s3495_s0 + $0x8] sm:$0xff]  ;;  %vm1601_vm0 = vcmask 850944  }
  0x1e   :  { %1661 = vmatprep.subr.bf16.mxu1 %v2840_v1  ;;  %v2844_v4 = vld [vmem:[#allocation2 + $0xc4] ss:$16 sps:$4 sm:$0xff]   ;;  %1619 = vmatpush1.bf16.msra.mxu0 %v2842_v2  ;;  %v2848_v6 = vld [vmem:[#allocation2 + $0xc0] ss:$16 sps:$4 sm:$0xff]   ;;  %v64_v47 = vld [vmem:[%s3495_s0 + $0x48] sm:$0xff]  ;;  %vm1605_vm1 = vcmask 1043456  }
  0x1f   :  { %1662 = vmatpush1.bf16.msra.mxu1 %v2843_v3  ;;  %v2846_v5 = vld [vmem:[#allocation2 + $0x2c4] ss:$16 sps:$4 sm:$0xff]   ;;  %1620 = vmatprep.subr.bf16.mxu0 %v2844_v4  ;;  %v2849_v7 = vld [vmem:[#allocation2 + $0x2c0] ss:$16 sps:$4 sm:$0xff]   ;;  %v58_v48 = vld [vmem:[%s3495_s0 + $0x18] sm:$0xff]  ;;  %v3364_v53 = vpack.c.bf16 %v64_v47, %v56_v46  ;;  %vm3305_vm2 = vmmov 0  }
  0x20   :  { %1663 = vmatprep.subr.bf16.mxu1 %v2846_v5  ;;  %v2850_v8 = vld [vmem:[#allocation2 + $0xa4] ss:$16 sps:$4 sm:$0xff]   ;;  %v2854_v10 = vld [vmem:[#allocation2 + $0xa0] ss:$16 sps:$4 sm:$0xff]   ;;  %v66_v49 = vld [vmem:[%s3495_s0 + $0x58] sm:$0xff] }
  0x21   :  { %v2852_v9 = vld [vmem:[#allocation2 + $0x2a4] ss:$16 sps:$4 sm:$0xff]   ;;  %v2855_v11 = vld [vmem:[#allocation2 + $0x2a0] ss:$16 sps:$4 sm:$0xff]   ;;  %v3366_v54 = vpack.c.bf16 %v66_v49, %v58_v48  ;;  %1650 = vmatprep.mubr.bf16.mxu0 %v3364_v53 }
  0x22   :  { %1621 = vmatpush1.bf16.msra.mxu0 %v2848_v6  ;;  %v2856_v12 = vld [vmem:[#allocation2 + $0x84] ss:$16 sps:$4 sm:$0xff]   ;;  %v2860_v14 = vld [vmem:[#allocation2 + $0x80] ss:$16 sps:$4 sm:$0xff]  }
  0x23   :  { %1664 = vmatpush1.bf16.msra.mxu1 %v2849_v7  ;;  %1622 = vmatprep.subr.bf16.mxu0 %v2850_v8  ;;  %v2858_v13 = vld [vmem:[#allocation2 + $0x284] ss:$16 sps:$4 sm:$0xff]   ;;  %v2861_v15 = vld [vmem:[#allocation2 + $0x280] ss:$16 sps:$4 sm:$0xff]  }
  0x24   :  { %1665 = vmatprep.subr.bf16.mxu1 %v2852_v9  ;;  %v2862_v16 = vld [vmem:[#allocation2 + $0x64] ss:$16 sps:$4 sm:$0xff]   ;;  %v2866_v18 = vld [vmem:[#allocation2 + $0x60] ss:$16 sps:$4 sm:$0xff]   ;;  %1693 = vmatprep.mubr.bf16.mxu1 %v3366_v54 }
  0x25   :  { %v2864_v17 = vld [vmem:[#allocation2 + $0x264] ss:$16 sps:$4 sm:$0xff]   ;;  %v2867_v19 = vld [vmem:[#allocation2 + $0x260] ss:$16 sps:$4 sm:$0xff]  }
  0x26   :  { %1623 = vmatpush1.bf16.msra.mxu0 %v2854_v10  ;;  %v2868_v20 = vld [vmem:[#allocation2 + $0x44] ss:$16 sps:$4 sm:$0xff]   ;;  %v2872_v22 = vld [vmem:[#allocation2 + $0x40] ss:$16 sps:$4 sm:$0xff]  }
  0x27   :  { %1666 = vmatpush1.bf16.msra.mxu1 %v2855_v11  ;;  %1624 = vmatprep.subr.bf16.mxu0 %v2856_v12  ;;  %v2870_v21 = vld [vmem:[#allocation2 + $0x244] ss:$16 sps:$4 sm:$0xff]   ;;  %v2873_v23 = vld [vmem:[#allocation2 + $0x240] ss:$16 sps:$4 sm:$0xff]  }
  0x28   :  { %1667 = vmatprep.subr.bf16.mxu1 %v2858_v13  ;;  %v2874_v24 = vld [vmem:[#allocation2 + $0x24] ss:$16 sps:$4 sm:$0xff]   ;;  %v2878_v26 = vld [vmem:[#allocation2 + $0x20] ss:$16 sps:$4 sm:$0xff]  }
  0x29   :  { %v2876_v25 = vld [vmem:[#allocation2 + $0x224] ss:$16 sps:$4 sm:$0xff]   ;;  %v2879_v27 = vld [vmem:[#allocation2 + $0x220] ss:$16 sps:$4 sm:$0xff]  }
  0x2a   :  { %1625 = vmatpush1.bf16.msra.mxu0 %v2860_v14  ;;  %v2880_v28 = vld [vmem:[#allocation2 + $0x4] ss:$16 sps:$4 sm:$0xff]   ;;  %v2884_v30 = vld [vmem:[#allocation2] ss:$16 sps:$4 sm:$0xff]  }
  0x2b   :  { %1668 = vmatpush1.bf16.msra.mxu1 %v2861_v15  ;;  %1626 = vmatprep.subr.bf16.mxu0 %v2862_v16  ;;  %v2882_v29 = vld [vmem:[#allocation2 + $0x204] ss:$16 sps:$4 sm:$0xff]   ;;  %v2885_v31 = vld [vmem:[#allocation2 + $0x200] ss:$16 sps:$4 sm:$0xff]  }
  0x2c   :  { %1669 = vmatprep.subr.bf16.mxu1 %v2864_v17  ;;  %v2886_v32 = vld [vmem:[#allocation2 + $0x1e4] ss:$16 sps:$4 sm:$0xff]   ;;  %v2890_v34 = vld [vmem:[#allocation2 + $0x1e0] ss:$16 sps:$4 sm:$0xff]  }
  0x2d   :  { %v2888_v33 = vld [vmem:[#allocation2 + $0x3e4] ss:$16 sps:$4 sm:$0xff]   ;;  %v2891_v35 = vld [vmem:[#allocation2 + $0x3e0] ss:$16 sps:$4 sm:$0xff]  }
  0x2e   :  { %1627 = vmatpush1.bf16.msra.mxu0 %v2866_v18  ;;  %v2892_v36 = vld [vmem:[#allocation2 + $0x1c4] ss:$16 sps:$4 sm:$0xff]   ;;  %v2896_v38 = vld [vmem:[#allocation2 + $0x1c0] ss:$16 sps:$4 sm:$0xff]  }
  0x2f   :  { %1670 = vmatpush1.bf16.msra.mxu1 %v2867_v19  ;;  %1628 = vmatprep.subr.bf16.mxu0 %v2868_v20  ;;  %v2894_v37 = vld [vmem:[#allocation2 + $0x3c4] ss:$16 sps:$4 sm:$0xff]   ;;  %v2897_v39 = vld [vmem:[#allocation2 + $0x3c0] ss:$16 sps:$4 sm:$0xff]  }
  0x30   :  { %1671 = vmatprep.subr.bf16.mxu1 %v2870_v21  ;;  %v2898_v40 = vld [vmem:[#allocation2 + $0x1a4] ss:$16 sps:$4 sm:$0xff]   ;;  %v2902_v42 = vld [vmem:[#allocation2 + $0x1a0] ss:$16 sps:$4 sm:$0xff]  }
  0x31   :  { %v2900_v41 = vld [vmem:[#allocation2 + $0x3a4] ss:$16 sps:$4 sm:$0xff]   ;;  %v2903_v43 = vld [vmem:[#allocation2 + $0x3a0] ss:$16 sps:$4 sm:$0xff]  }
  0x32   :  { %1629 = vmatpush1.bf16.msra.mxu0 %v2872_v22  ;;  %v2904_v44 = vld [vmem:[#allocation2 + $0x184] ss:$16 sps:$4 sm:$0xff]   ;;  %v2908_v50 = vld [vmem:[#allocation2 + $0x180] ss:$16 sps:$4 sm:$0xff]  }
  0x33   :  { %1672 = vmatpush1.bf16.msra.mxu1 %v2873_v23  ;;  %1630 = vmatprep.subr.bf16.mxu0 %v2874_v24  ;;  %v2906_v45 = vld [vmem:[#allocation2 + $0x384] ss:$16 sps:$4 sm:$0xff]   ;;  %v2909_v51 = vld [vmem:[#allocation2 + $0x380] ss:$16 sps:$4 sm:$0xff]  }
  0x34   :  { %1673 = vmatprep.subr.bf16.mxu1 %v2876_v25  ;;  %v2910_v52 = vld [vmem:[#allocation2 + $0x164] ss:$16 sps:$4 sm:$0xff]   ;;  %v2914_v56 = vld [vmem:[#allocation2 + $0x160] ss:$16 sps:$4 sm:$0xff]  }
  0x35   :  { %v2912_v55 = vld [vmem:[#allocation2 + $0x364] ss:$16 sps:$4 sm:$0xff]   ;;  %v2915_v57 = vld [vmem:[#allocation2 + $0x360] ss:$16 sps:$4 sm:$0xff]  }
  0x36   :  { %1631 = vmatpush1.bf16.msra.mxu0 %v2878_v26  ;;  %v2916_v58 = vld [vmem:[#allocation2 + $0x144] ss:$16 sps:$4 sm:$0xff]   ;;  %v2920_v60 = vld [vmem:[#allocation2 + $0x140] ss:$16 sps:$4 sm:$0xff]  }
  0x37   :  { %1674 = vmatpush1.bf16.msra.mxu1 %v2879_v27  ;;  %1632 = vmatprep.subr.bf16.mxu0 %v2880_v28  ;;  %v2918_v59 = vld [vmem:[#allocation2 + $0x344] ss:$16 sps:$4 sm:$0xff]   ;;  %v2921_v61 = vld [vmem:[#allocation2 + $0x340] ss:$16 sps:$4 sm:$0xff]  }
  0x38   :  { %1675 = vmatprep.subr.bf16.mxu1 %v2882_v29  ;;  %v2922_v62 = vld [vmem:[#allocation2 + $0x124] ss:$16 sps:$4 sm:$0xff]   ;;  %v2926_v0 = vld [vmem:[#allocation2 + $0x120] ss:$16 sps:$4 sm:$0xff]  }
  0x39   :  { %v2924_v63 = vld [vmem:[#allocation2 + $0x324] ss:$16 sps:$4 sm:$0xff]   ;;  %v2927_v1 = vld [vmem:[#allocation2 + $0x320] ss:$16 sps:$4 sm:$0xff]  }
  0x3a   :  { %1633 = vmatpush1.bf16.msra.mxu0 %v2884_v30  ;;  %v2928_v2 = vld [vmem:[#allocation2 + $0x104] ss:$16 sps:$4 sm:$0xff]   ;;  %v2932_v4 = vld [vmem:[#allocation2 + $0x100] ss:$16 sps:$4 sm:$0xff]  }
  0x3b   :  { %1676 = vmatpush1.bf16.msra.mxu1 %v2885_v31  ;;  %1634 = vmatprep.subr.bf16.mxu0 %v2886_v32  ;;  %v2930_v3 = vld [vmem:[#allocation2 + $0x304] ss:$16 sps:$4 sm:$0xff]   ;;  %v2933_v5 = vld [vmem:[#allocation2 + $0x300] ss:$16 sps:$4 sm:$0xff]  }
  0x3c   :  { %1677 = vmatprep.subr.bf16.mxu1 %v2888_v33  ;;  %v55_v6 = vld [vmem:[%s3495_s0] sm:$0xff]  ;;  %v57_v8 = vld [vmem:[%s3495_s0 + $0x10] sm:$0xff] }
  0x3d   :  { %v63_v7 = vld [vmem:[%s3495_s0 + $0x40] sm:$0xff]  ;;  %v65_v9 = vld [vmem:[%s3495_s0 + $0x50] sm:$0xff] }
  0x3e   :  { %1635 = vmatpush2.bf16.msra.mxu0 %v2890_v34  ;;  %v2936_v10 = vld [vmem:[#allocation2 + $0x4e4] ss:$16 sps:$4 sm:$0xff]   ;;  %v3382_v12 = vpack.c.bf16 %v63_v7, %v55_v6  ;;  %v3384_v13 = vpack.c.bf16 %v65_v9, %v57_v8  ;;  %v2934_v14 = vld [vmem:[#allocation2 + $0x4e0] ss:$16 sps:$4 sm:$0xff]  }
  0x3f   :  { %1678 = vmatpush2.bf16.msra.mxu1 %v2891_v35  ;;  %1636 = vmatprep.subr.bf16.mxu0 %v2892_v36  ;;  %v2939_v11 = vld [vmem:[#allocation2 + $0x6e4] ss:$16 sps:$4 sm:$0xff]   ;;  %v2937_v15 = vld [vmem:[#allocation2 + $0x6e0] ss:$16 sps:$4 sm:$0xff]  }
  0x40   :  { %1679 = vmatprep.subr.bf16.mxu1 %v2894_v37  ;;  %v2942_v16 = vld [vmem:[#allocation2 + $0x4c4] ss:$16 sps:$4 sm:$0xff]   ;;  %v2940_v18 = vld [vmem:[#allocation2 + $0x4c0] ss:$16 sps:$4 sm:$0xff]   ;;  %v62_v37 = vld [vmem:[%s3495_s0 + $0x38] sm:$0xff] }
  0x41   :  { %v2945_v17 = vld [vmem:[#allocation2 + $0x6c4] ss:$16 sps:$4 sm:$0xff]   ;;  %v2943_v19 = vld [vmem:[#allocation2 + $0x6c0] ss:$16 sps:$4 sm:$0xff]  }
  0x42   :  { %1637 = vmatpush2.bf16.msra.mxu0 %v2896_v38  ;;  %v2948_v20 = vld [vmem:[#allocation2 + $0x4a4] ss:$16 sps:$4 sm:$0xff]   ;;  %v2946_v22 = vld [vmem:[#allocation2 + $0x4a0] ss:$16 sps:$4 sm:$0xff]   ;;  %v70_v38 = vld [vmem:[%s3495_s0 + $0x78] sm:$0xff] }
  0x43   :  { %1680 = vmatpush2.bf16.msra.mxu1 %v2897_v39  ;;  %1638 = vmatprep.subr.bf16.mxu0 %v2898_v40  ;;  %v2951_v21 = vld [vmem:[#allocation2 + $0x6a4] ss:$16 sps:$4 sm:$0xff]   ;;  %v2949_v23 = vld [vmem:[#allocation2 + $0x6a0] ss:$16 sps:$4 sm:$0xff]   ;;  %v3394_v40 = vpack.c.bf16 %v70_v38, %v62_v37  ;;  %v3038_v37 = vld [vmem:[#allocation2 + $0x2c8] ss:$16 sps:$4 sm:$0xff]  }
  0x44   :  { %1681 = vmatprep.subr.bf16.mxu1 %v2900_v41  ;;  %v2954_v24 = vld [vmem:[#allocation2 + $0x484] ss:$16 sps:$4 sm:$0xff]   ;;  %v2952_v26 = vld [vmem:[#allocation2 + $0x480] ss:$16 sps:$4 sm:$0xff]   ;;  %v3043_v38 = vld [vmem:[#allocation2 + $0x8c] ss:$16 sps:$4 sm:$0xff]  }
  0x45   :  { %v2957_v25 = vld [vmem:[#allocation2 + $0x684] ss:$16 sps:$4 sm:$0xff]   ;;  %v2955_v27 = vld [vmem:[#allocation2 + $0x680] ss:$16 sps:$4 sm:$0xff]  }
  0x46   :  { %1639 = vmatpush2.bf16.msra.mxu0 %v2902_v42  ;;  %v2960_v28 = vld [vmem:[#allocation2 + $0x464] ss:$16 sps:$4 sm:$0xff]   ;;  %v2958_v30 = vld [vmem:[#allocation2 + $0x460] ss:$16 sps:$4 sm:$0xff]  }
  0x47   :  { %1682 = vmatpush2.bf16.msra.mxu1 %v2903_v43  ;;  %1640 = vmatprep.subr.bf16.mxu0 %v2904_v44  ;;  %v2963_v29 = vld [vmem:[#allocation2 + $0x664] ss:$16 sps:$4 sm:$0xff]   ;;  %v2961_v31 = vld [vmem:[#allocation2 + $0x660] ss:$16 sps:$4 sm:$0xff]   ;;  %v60_v43 = vld [vmem:[%s3495_s0 + $0x28] sm:$0xff] }
  0x48   :  { %1683 = vmatprep.subr.bf16.mxu1 %v2906_v45  ;;  %v2966_v32 = vld [vmem:[#allocation2 + $0x444] ss:$16 sps:$4 sm:$0xff]   ;;  %v2964_v34 = vld [vmem:[#allocation2 + $0x440] ss:$16 sps:$4 sm:$0xff]   ;;  %v68_v44 = vld [vmem:[%s3495_s0 + $0x68] sm:$0xff] }
  0x49   :  { %v2969_v33 = vld [vmem:[#allocation2 + $0x644] ss:$16 sps:$4 sm:$0xff]   ;;  %v2967_v35 = vld [vmem:[#allocation2 + $0x640] ss:$16 sps:$4 sm:$0xff]   ;;  %v3404_v47 = vpack.c.bf16 %v68_v44, %v60_v43  ;;  %v3049_v43 = vld [vmem:[#allocation2 + $0x6c] ss:$16 sps:$4 sm:$0xff]  }
  0x4a   :  { %1641 = vmatpush2.bf16.msra.mxu0 %v2908_v50  ;;  %v2972_v36 = vld [vmem:[#allocation2 + $0x424] ss:$16 sps:$4 sm:$0xff]   ;;  %v2970_v41 = vld [vmem:[#allocation2 + $0x420] ss:$16 sps:$4 sm:$0xff]   ;;  %v3047_v44 = vld [vmem:[#allocation2 + $0x68] ss:$16 sps:$4 sm:$0xff]  }
  0x4b   :  { %1684 = vmatpush2.bf16.msra.mxu1 %v2909_v51  ;;  %1642 = vmatprep.subr.bf16.mxu0 %v2910_v52  ;;  %v2975_v39 = vld [vmem:[#allocation2 + $0x624] ss:$16 sps:$4 sm:$0xff]   ;;  %v2973_v42 = vld [vmem:[#allocation2 + $0x620] ss:$16 sps:$4 sm:$0xff]  }
  0x4c   :  { %1685 = vmatprep.subr.bf16.mxu1 %v2912_v55  ;;  %v2978_v45 = vld [vmem:[#allocation2 + $0x404] ss:$16 sps:$4 sm:$0xff]   ;;  %v2976_v49 = vld [vmem:[#allocation2 + $0x400] ss:$16 sps:$4 sm:$0xff]  }
  0x4d   :  { %v2981_v46 = vld [vmem:[#allocation2 + $0x604] ss:$16 sps:$4 sm:$0xff]   ;;  %v2979_v50 = vld [vmem:[#allocation2 + $0x600] ss:$16 sps:$4 sm:$0xff]  }
  0x4e   :  { %1643 = vmatpush2.bf16.msra.mxu0 %v2914_v56  ;;  %v327_v48 = vld [vmem:[#allocation2 + $0x7c0] sm:$0xff] }
  0x4f   :  { %1686 = vmatpush2.bf16.msra.mxu1 %v2915_v57  ;;  %1644 = vmatprep.subr.bf16.mxu0 %v2916_v58  ;;  %v2984_v51 = vld [vmem:[#allocation2 + $0x5e4] ss:$16 sps:$4 sm:$0xff]   ;;  %v2699_v52 = vcombine.high %v327_v48, %v327_v48  ;;  %v2698_v55 = vcombine.low %v327_v48, %v327_v48  ;;  %v2982_v56 = vld [vmem:[#allocation2 + $0x5e0] ss:$16 sps:$4 sm:$0xff]   ;;  %v3058_v48 = vld [vmem:[#allocation2 + $0x26c] ss:$16 sps:$4 sm:$0xff]  }
  0x50   :  { %1687 = vmatprep.subr.bf16.mxu1 %v2918_v59  ;;  %v2989_v58 = vld [vmem:[#allocation2 + $0x5c4] ss:$16 sps:$4 sm:$0xff]   ;;  %v3005_v8 = vld [vmem:[#allocation2 + $0x560] ss:$16 sps:$4 sm:$0xff]  }
  0x51   :  { %v1607_v57 = vsel %vm1605_vm1, %v2698_v55, 0  ;;  %v2992_v59 = vld [vmem:[#allocation2 + $0x7a4] ss:$16 sps:$4 sm:$0xff]   ;;  %v3008_v9 = vld [vmem:[#allocation2 + $0x740] ss:$16 sps:$4 sm:$0xff]  }
  0x52   :  { %1645 = vmatpush2.bf16.msra.mxu0 %v2920_v60  ;;  %v2987_v60 = vld [vmem:[#allocation2 + $0x5c0] ss:$16 sps:$4 sm:$0xff]   ;;  %v3007_v6 = vld [vmem:[#allocation2 + $0x564] ss:$16 sps:$4 sm:$0xff]   ;;  %v3062_v55 = vld [vmem:[#allocation2 + $0x248] ss:$16 sps:$4 sm:$0xff]  }
  0x53   :  { %1688 = vmatpush2.bf16.msra.mxu1 %v2921_v61  ;;  %1646 = vmatprep.subr.bf16.mxu0 %v2922_v62  ;;  %v2990_v61 = vld [vmem:[#allocation2 + $0x7a0] ss:$16 sps:$4 sm:$0xff]   ;;  %v2995_v62 = vld [vmem:[#allocation2 + $0x5a4] ss:$16 sps:$4 sm:$0xff]  }
  0x54   :  { %1689 = vmatprep.subr.bf16.mxu1 %v2924_v63  ;;  %v2998_v63 = vld [vmem:[#allocation2 + $0x784] ss:$16 sps:$4 sm:$0xff]  }
  0x55   :  { %v3010_v7 = vld [vmem:[#allocation2 + $0x744] ss:$16 sps:$4 sm:$0xff]  }
  0x56   :  { %1647 = vmatpush2.bf16.msra.mxu0 %v2926_v0  ;;  %v2993_v0 = vld [vmem:[#allocation2 + $0x5a0] ss:$16 sps:$4 sm:$0xff]  }
  0x57   :  { %1690 = vmatpush2.bf16.msra.mxu1 %v2927_v1  ;;  %1648 = vmatprep.subr.bf16.mxu0 %v2928_v2  ;;  %v2996_v1 = vld [vmem:[#allocation2 + $0x780] ss:$16 sps:$4 sm:$0xff]   ;;  %v3001_v2 = vld [vmem:[#allocation2 + $0x584] ss:$16 sps:$4 sm:$0xff]  }
  0x58   :  { %1691 = vmatprep.subr.bf16.mxu1 %v2930_v3  ;;  %v3004_v3 = vld [vmem:[#allocation2 + $0x764] ss:$16 sps:$4 sm:$0xff]  }
  0x5a   :  { %1649 = vmatpush2.bf16.msra.mxu0 %v2932_v4  ;;  %v2999_v4 = vld [vmem:[#allocation2 + $0x580] ss:$16 sps:$4 sm:$0xff]  }
  0x5b   :  { %1692 = vmatpush2.bf16.msra.mxu1 %v2933_v5  ;;  %1704 = vmatprep.subr.bf16.mxu0 %v2936_v10  ;;  %v3002_v5 = vld [vmem:[#allocation2 + $0x760] ss:$16 sps:$4 sm:$0xff]   ;;  %v3013_v10 = vld [vmem:[#allocation2 + $0x544] ss:$16 sps:$4 sm:$0xff]  }
  0x5c   :  { %1747 = vmatprep.subr.bf16.mxu1 %v2939_v11  ;;  %v3016_v11 = vld [vmem:[#allocation2 + $0x724] ss:$16 sps:$4 sm:$0xff]  }
  0x5d   :  { %1651 = vmatmul.mubr.bf16.vlgmr.msra.gmra.mxu0 %v3382_v12 }
  0x5e   :  { %1694 = vmatmul.mubr.bf16.vlgmr.msra.gmra.mxu1 %v3384_v13  ;;  %1705 = vmatpush1.bf16.msra.mxu0 %v2934_v14  ;;  %v3011_v14 = vld [vmem:[#allocation2 + $0x540] ss:$16 sps:$4 sm:$0xff]  }
  0x5f   :  { %1748 = vmatpush1.bf16.msra.mxu1 %v2937_v15  ;;  %1706 = vmatprep.subr.bf16.mxu0 %v2942_v16  ;;  %v3014_v15 = vld [vmem:[#allocation2 + $0x720] ss:$16 sps:$4 sm:$0xff]   ;;  %v3019_v16 = vld [vmem:[#allocation2 + $0x524] ss:$16 sps:$4 sm:$0xff]  }
  0x60   :  { %1749 = vmatprep.subr.bf16.mxu1 %v2945_v17  ;;  %2703 = vmatprep.mubr.msk.bf16.mxu1 %vm1601_vm0, %v3394_v40  ;;  %v3022_v17 = vld [vmem:[#allocation2 + $0x704] ss:$16 sps:$4 sm:$0xff]  }
  0x61   :  { %1736 = vmatprep.mubr.bf16.mxu0 %v3404_v47 }
  0x62   :  { %1707 = vmatpush1.bf16.msra.mxu0 %v2940_v18  ;;  %v3017_v18 = vld [vmem:[#allocation2 + $0x520] ss:$16 sps:$4 sm:$0xff]  }
  0x63   :  { %1750 = vmatpush1.bf16.msra.mxu1 %v2943_v19  ;;  %1708 = vmatprep.subr.bf16.mxu0 %v2948_v20  ;;  %v3020_v19 = vld [vmem:[#allocation2 + $0x700] ss:$16 sps:$4 sm:$0xff]  }
  0x64   :  { %1751 = vmatprep.subr.bf16.mxu1 %v2951_v21  ;;  %v61_v20 = vld [vmem:[%s3495_s0 + $0x30] sm:$0xff] }
  0x65   :  { %v69_v21 = vld [vmem:[%s3495_s0 + $0x70] sm:$0xff] }
  0x66   :  { %1709 = vmatpush1.bf16.msra.mxu0 %v2946_v22  ;;  %v3025_v22 = vld [vmem:[#allocation2 + $0x504] ss:$16 sps:$4 sm:$0xff]  }
  0x67   :  { %1752 = vmatpush1.bf16.msra.mxu1 %v2949_v23  ;;  %1710 = vmatprep.subr.bf16.mxu0 %v2954_v24  ;;  %v3028_v23 = vld [vmem:[#allocation2 + $0xec] ss:$16 sps:$4 sm:$0xff]   ;;  %v3023_v24 = vld [vmem:[#allocation2 + $0x500] ss:$16 sps:$4 sm:$0xff]  }
  0x68   :  { %1753 = vmatprep.subr.bf16.mxu1 %v2957_v25  ;;  %v3026_v25 = vld [vmem:[#allocation2 + $0xe8] ss:$16 sps:$4 sm:$0xff]  }
  0x6a   :  { %1711 = vmatpush1.bf16.msra.mxu0 %v2952_v26  ;;  %v3415_v26 = vpack.c.bf16 %v69_v21, %v61_v20  ;;  %v3101_v20 = vld [vmem:[#allocation2 + $0x148] ss:$16 sps:$4 sm:$0xff]  }
  0x6b   :  { %1754 = vmatpush1.bf16.msra.mxu1 %v2955_v27  ;;  %1712 = vmatprep.subr.bf16.mxu0 %v2960_v28  ;;  %v59_v27 = vld [vmem:[%s3495_s0 + $0x20] sm:$0xff]  ;;  %v3104_v21 = vld [vmem:[#allocation2 + $0x368] ss:$16 sps:$4 sm:$0xff]  }
  0x6c   :  { %1755 = vmatprep.subr.bf16.mxu1 %v2963_v29  ;;  %v67_v28 = vld [vmem:[%s3495_s0 + $0x60] sm:$0xff]  ;;  %v3031_v29 = vld [vmem:[#allocation2 + $0xcc] ss:$16 sps:$4 sm:$0xff]  }
  0x6e   :  { %1713 = vmatpush1.bf16.msra.mxu0 %v2958_v30  ;;  %v3034_v30 = vld [vmem:[#allocation2 + $0x2ec] ss:$16 sps:$4 sm:$0xff]  }
  0x6f   :  { %1756 = vmatpush1.bf16.msra.mxu1 %v2961_v31  ;;  %1714 = vmatprep.subr.bf16.mxu0 %v2966_v32  ;;  %v3424_v31 = vpack.c.bf16 %v67_v28, %v59_v27  ;;  %v3029_v32 = vld [vmem:[#allocation2 + $0xc8] ss:$16 sps:$4 sm:$0xff]   ;;  %v3115_v27 = vld [vmem:[#allocation2 + $0x10c] ss:$16 sps:$4 sm:$0xff]  }
  0x70   :  { %1757 = vmatprep.subr.bf16.mxu1 %v2969_v33  ;;  %v3032_v33 = vld [vmem:[#allocation2 + $0x2e8] ss:$16 sps:$4 sm:$0xff]   ;;  %v3118_v28 = vld [vmem:[#allocation2 + $0x32c] ss:$16 sps:$4 sm:$0xff]  }
  0x72   :  { %1715 = vmatpush1.bf16.msra.mxu0 %v2964_v34  ;;  %v3037_v34 = vld [vmem:[#allocation2 + $0xac] ss:$16 sps:$4 sm:$0xff]  }
  0x73   :  { %1758 = vmatpush1.bf16.msra.mxu1 %v2967_v35  ;;  %1716 = vmatprep.subr.bf16.mxu0 %v2972_v36  ;;  %v3040_v35 = vld [vmem:[#allocation2 + $0x2cc] ss:$16 sps:$4 sm:$0xff]   ;;  %v3035_v36 = vld [vmem:[#allocation2 + $0xa8] ss:$16 sps:$4 sm:$0xff]  }
  0x74   :  { %1759 = vmatprep.subr.bf16.mxu1 %v2975_v39  ;;  %v3046_v39 = vld [vmem:[#allocation2 + $0x2ac] ss:$16 sps:$4 sm:$0xff]  }
  0x76   :  { %1717 = vmatpush1.bf16.msra.mxu0 %v2970_v41  ;;  %v3041_v41 = vld [vmem:[#allocation2 + $0x88] ss:$16 sps:$4 sm:$0xff]  }
  0x77   :  { %1760 = vmatpush1.bf16.msra.mxu1 %v2973_v42  ;;  %1718 = vmatprep.subr.bf16.mxu0 %v2978_v45  ;;  %v3044_v42 = vld [vmem:[#allocation2 + $0x2a8] ss:$16 sps:$4 sm:$0xff]  }
  0x78   :  { %1761 = vmatprep.subr.bf16.mxu1 %v2981_v46  ;;  %v3050_v45 = vld [vmem:[#allocation2 + $0x288] ss:$16 sps:$4 sm:$0xff]   ;;  %v3055_v46 = vld [vmem:[#allocation2 + $0x4c] ss:$16 sps:$4 sm:$0xff]  }
  0x7a   :  { %1719 = vmatpush1.bf16.msra.mxu0 %v2976_v49  ;;  %v3053_v49 = vld [vmem:[#allocation2 + $0x48] ss:$16 sps:$4 sm:$0xff]  }
  0x7b   :  { %1762 = vmatpush1.bf16.msra.mxu1 %v2979_v50  ;;  %1720 = vmatprep.subr.bf16.mxu0 %v2984_v51  ;;  %v3061_v50 = vld [vmem:[#allocation2 + $0x2c] ss:$16 sps:$4 sm:$0xff]  }
  0x7c   :  { %2702 = vmatprep.subr.msk.bf16.mxu1 %vm1605_vm1, %v2699_v52  ;;  %v3064_v51 = vld [vmem:[#allocation2 + $0x24c] ss:$16 sps:$4 sm:$0xff]   ;;  %v3059_v52 = vld [vmem:[#allocation2 + $0x28] ss:$16 sps:$4 sm:$0xff]  }
  0x7e   :  { %1721 = vmatpush2.bf16.msra.mxu0 %v2982_v56  ;;  %v3067_v56 = vld [vmem:[#allocation2 + $0xc] ss:$16 sps:$4 sm:$0xff]  }
  0x7f   :  { %1766 = vmatpush2.bf16.msra.mxu1 %v1607_v57  ;;  %1722 = vmatprep.subr.bf16.mxu0 %v2989_v58  ;;  %v3070_v57 = vld [vmem:[#allocation2 + $0x22c] ss:$16 sps:$4 sm:$0xff]   ;;  %v3065_v58 = vld [vmem:[#allocation2 + $0x8] ss:$16 sps:$4 sm:$0xff]  }
  0x80   :  { %1767 = vmatprep.subr.bf16.mxu1 %v2992_v59  ;;  %v3068_v59 = vld [vmem:[#allocation2 + $0x228] ss:$16 sps:$4 sm:$0xff]  }
  0x82   :  { %1723 = vmatpush2.bf16.msra.mxu0 %v2987_v60  ;;  %v3073_v60 = vld [vmem:[#allocation2 + $0x1ec] ss:$16 sps:$4 sm:$0xff]  }
  0x83   :  { %1768 = vmatpush2.bf16.msra.mxu1 %v2990_v61  ;;  %1724 = vmatprep.subr.bf16.mxu0 %v2995_v62  ;;  %v3076_v61 = vld [vmem:[#allocation2 + $0x20c] ss:$16 sps:$4 sm:$0xff]   ;;  %v3071_v62 = vld [vmem:[#allocation2 + $0x1e8] ss:$16 sps:$4 sm:$0xff]  }
  0x84   :  { %1769 = vmatprep.subr.bf16.mxu1 %v2998_v63  ;;  %v3074_v63 = vld [vmem:[#allocation2 + $0x208] ss:$16 sps:$4 sm:$0xff]  }
  0x86   :  { %1725 = vmatpush2.bf16.msra.mxu0 %v2993_v0  ;;  %v3079_v0 = vld [vmem:[#allocation2 + $0x1cc] ss:$16 sps:$4 sm:$0xff]  }
  0x87   :  { %1770 = vmatpush2.bf16.msra.mxu1 %v2996_v1  ;;  %1726 = vmatprep.subr.bf16.mxu0 %v3001_v2  ;;  %v3082_v1 = vld [vmem:[#allocation2 + $0x3ec] ss:$16 sps:$4 sm:$0xff]   ;;  %v3077_v2 = vld [vmem:[#allocation2 + $0x1c8] ss:$16 sps:$4 sm:$0xff]  }
  0x88   :  { %1771 = vmatprep.subr.bf16.mxu1 %v3004_v3  ;;  %v3080_v3 = vld [vmem:[#allocation2 + $0x3e8] ss:$16 sps:$4 sm:$0xff]  }
  0x8a   :  { %1727 = vmatpush2.bf16.msra.mxu0 %v2999_v4  ;;  %v3085_v4 = vld [vmem:[#allocation2 + $0x1ac] ss:$16 sps:$4 sm:$0xff]  }
  0x8b   :  { %1772 = vmatpush2.bf16.msra.mxu1 %v3002_v5  ;;  %1728 = vmatprep.subr.bf16.mxu0 %v3007_v6  ;;  %v3088_v5 = vld [vmem:[#allocation2 + $0x3cc] ss:$16 sps:$4 sm:$0xff]   ;;  %v3083_v6 = vld [vmem:[#allocation2 + $0x1a8] ss:$16 sps:$4 sm:$0xff]  }
  0x8c   :  { %1773 = vmatprep.subr.bf16.mxu1 %v3010_v7  ;;  %v3086_v7 = vld [vmem:[#allocation2 + $0x3c8] ss:$16 sps:$4 sm:$0xff]  }
  0x8e   :  { %1729 = vmatpush2.bf16.msra.mxu0 %v3005_v8  ;;  %v3091_v8 = vld [vmem:[#allocation2 + $0x18c] ss:$16 sps:$4 sm:$0xff]  }
  0x8f   :  { %1774 = vmatpush2.bf16.msra.mxu1 %v3008_v9  ;;  %1730 = vmatprep.subr.bf16.mxu0 %v3013_v10  ;;  %v3094_v9 = vld [vmem:[#allocation2 + $0x3ac] ss:$16 sps:$4 sm:$0xff]   ;;  %v3089_v10 = vld [vmem:[#allocation2 + $0x188] ss:$16 sps:$4 sm:$0xff]  }
  0x90   :  { %1775 = vmatprep.subr.bf16.mxu1 %v3016_v11  ;;  %v3092_v11 = vld [vmem:[#allocation2 + $0x3a8] ss:$16 sps:$4 sm:$0xff]  }
  0x92   :  { %1731 = vmatpush2.bf16.msra.mxu0 %v3011_v14  ;;  %v3097_v14 = vld [vmem:[#allocation2 + $0x16c] ss:$16 sps:$4 sm:$0xff]  }
  0x93   :  { %1776 = vmatpush2.bf16.msra.mxu1 %v3014_v15  ;;  %1732 = vmatprep.subr.bf16.mxu0 %v3019_v16  ;;  %v3100_v15 = vld [vmem:[#allocation2 + $0x38c] ss:$16 sps:$4 sm:$0xff]   ;;  %v3095_v16 = vld [vmem:[#allocation2 + $0x168] ss:$16 sps:$4 sm:$0xff]  }
  0x94   :  { %1777 = vmatprep.subr.bf16.mxu1 %v3022_v17  ;;  %v3098_v17 = vld [vmem:[#allocation2 + $0x388] ss:$16 sps:$4 sm:$0xff]  }
  0x96   :  { %1733 = vmatpush2.bf16.msra.mxu0 %v3017_v18  ;;  %v3103_v18 = vld [vmem:[#allocation2 + $0x14c] ss:$16 sps:$4 sm:$0xff]  }
  0x97   :  { %1778 = vmatpush2.bf16.msra.mxu1 %v3020_v19  ;;  %1734 = vmatprep.subr.bf16.mxu0 %v3025_v22  ;;  %v3106_v19 = vld [vmem:[#allocation2 + $0x36c] ss:$16 sps:$4 sm:$0xff]  }
  0x98   :  { %1790 = vmatprep.subr.bf16.mxu1 %v3028_v23  ;;  %v3109_v22 = vld [vmem:[#allocation2 + $0x12c] ss:$16 sps:$4 sm:$0xff]  }
  0x99   :  { %v3112_v23 = vld [vmem:[#allocation2 + $0x34c] ss:$16 sps:$4 sm:$0xff]  }
  0x9a   :  { %1780 = vmatmul.mubr.bf16.vlgmr.msra.gmra.mxu1 %v3415_v26  ;;  %1735 = vmatpush2.bf16.msra.mxu0 %v3023_v24  ;;  %v3107_v24 = vld [vmem:[#allocation2 + $0x128] ss:$16 sps:$4 sm:$0xff]  }
  0x9b   :  { %1791 = vmatpush1.bf16.msra.mxu1 %v3026_v25  ;;  %1833 = vmatprep.subr.bf16.mxu0 %v3034_v30  ;;  %v3110_v25 = vld [vmem:[#allocation2 + $0x348] ss:$16 sps:$4 sm:$0xff]  }
  0x9c   :  { %1792 = vmatprep.subr.bf16.mxu1 %v3031_v29  ;;  %1822 = vmatprep.mubr.bf16.mxu1 %v3364_v53  ;;  %v3052_v53 = vld [vmem:[#allocation2 + $0x28c] ss:$16 sps:$4 sm:$0xff]   ;;  %v3113_v29 = vld [vmem:[#allocation2 + $0x108] ss:$16 sps:$4 sm:$0xff]  }
  0x9d   :  { %1737 = vmatmul.mubr.bf16.vlgmr.msra.gmra.mxu0 %v3424_v31  ;;  %v3116_v30 = vld [vmem:[#allocation2 + $0x328] ss:$16 sps:$4 sm:$0xff]  }
  0x9e   :  { %1834 = vmatpush1.bf16.msra.mxu0 %v3032_v33  ;;  %1865 = vmatprep.mubr.bf16.mxu0 %v3366_v54  ;;  %v3056_v54 = vld [vmem:[#allocation2 + $0x268] ss:$16 sps:$4 sm:$0xff]   ;;  %v3124_v33 = vld [vmem:[#allocation2 + $0x4ec] ss:$16 sps:$4 sm:$0xff]  }
  0x9f   :  { %1793 = vmatpush1.bf16.msra.mxu1 %v3029_v32  ;;  %1835 = vmatprep.subr.bf16.mxu0 %v3040_v35  ;;  %v3121_v32 = vld [vmem:[#allocation2 + $0x30c] ss:$16 sps:$4 sm:$0xff]   ;;  %v3122_v35 = vld [vmem:[#allocation2 + $0x4e8] ss:$16 sps:$4 sm:$0xff]  }
  0xa0   :  { %1794 = vmatprep.subr.bf16.mxu1 %v3037_v34  ;;  %v3119_v34 = vld [vmem:[#allocation2 + $0x308] ss:$16 sps:$4 sm:$0xff]  }
  0xa2   :  { %1836 = vmatpush1.bf16.msra.mxu0 %v3038_v37  ;;  %v3130_v37 = vld [vmem:[#allocation2 + $0x6ec] ss:$16 sps:$4 sm:$0xff]  }
  0xa3   :  { %1795 = vmatpush1.bf16.msra.mxu1 %v3035_v36  ;;  %1837 = vmatprep.subr.bf16.mxu0 %v3046_v39  ;;  %v3127_v36 = vld [vmem:[#allocation2 + $0x4cc] ss:$16 sps:$4 sm:$0xff]   ;;  %v3128_v39 = vld [vmem:[#allocation2 + $0x6e8] ss:$16 sps:$4 sm:$0xff]  }
  0xa4   :  { %1796 = vmatprep.subr.bf16.mxu1 %v3043_v38  ;;  %v3125_v38 = vld [vmem:[#allocation2 + $0x4c8] ss:$16 sps:$4 sm:$0xff]  }
  0xa6   :  { %1838 = vmatpush1.bf16.msra.mxu0 %v3044_v42  ;;  %v3136_v42 = vld [vmem:[#allocation2 + $0x6cc] ss:$16 sps:$4 sm:$0xff]  }
  0xa7   :  { %1797 = vmatpush1.bf16.msra.mxu1 %v3041_v41  ;;  %1839 = vmatprep.subr.bf16.mxu0 %v3052_v53  ;;  %v3133_v41 = vld [vmem:[#allocation2 + $0x4ac] ss:$16 sps:$4 sm:$0xff]   ;;  %v3134_v53 = vld [vmem:[#allocation2 + $0x6c8] ss:$16 sps:$4 sm:$0xff]  }
  0xa8   :  { %1798 = vmatprep.subr.bf16.mxu1 %v3049_v43  ;;  %v3131_v43 = vld [vmem:[#allocation2 + $0x4a8] ss:$16 sps:$4 sm:$0xff]  }
  0xaa   :  { %1840 = vmatpush1.bf16.msra.mxu0 %v3050_v45  ;;  %v3142_v45 = vld [vmem:[#allocation2 + $0x6ac] ss:$16 sps:$4 sm:$0xff]  }
  0xab   :  { %1799 = vmatpush1.bf16.msra.mxu1 %v3047_v44  ;;  %1841 = vmatprep.subr.bf16.mxu0 %v3058_v48  ;;  %v3139_v44 = vld [vmem:[#allocation2 + $0x48c] ss:$16 sps:$4 sm:$0xff]  }
  0xac   :  { %1800 = vmatprep.subr.bf16.mxu1 %v3055_v46  ;;  %v3137_v46 = vld [vmem:[#allocation2 + $0x488] ss:$16 sps:$4 sm:$0xff]   ;;  %v3145_v48 = vld [vmem:[#allocation2 + $0x46c] ss:$16 sps:$4 sm:$0xff]  }
  0xae   :  { %1842 = vmatpush1.bf16.msra.mxu0 %v3056_v54  ;;  %v3151_v54 = vld [vmem:[#allocation2 + $0x44c] ss:$16 sps:$4 sm:$0xff]  }
  0xaf   :  { %1801 = vmatpush1.bf16.msra.mxu1 %v3053_v49  ;;  %1843 = vmatprep.subr.bf16.mxu0 %v3064_v51  ;;  %v3148_v49 = vld [vmem:[#allocation2 + $0x68c] ss:$16 sps:$4 sm:$0xff]   ;;  %v3149_v51 = vld [vmem:[#allocation2 + $0x448] ss:$16 sps:$4 sm:$0xff]  }
  0xb0   :  { %1802 = vmatprep.subr.bf16.mxu1 %v3061_v50  ;;  %v3154_v50 = vld [vmem:[#allocation2 + $0x66c] ss:$16 sps:$4 sm:$0xff]  }
  0xb2   :  { %1844 = vmatpush1.bf16.msra.mxu0 %v3062_v55  ;;  %v3160_v55 = vld [vmem:[#allocation2 + $0x64c] ss:$16 sps:$4 sm:$0xff]  }
  0xb3   :  { %1803 = vmatpush1.bf16.msra.mxu1 %v3059_v52  ;;  %1845 = vmatprep.subr.bf16.mxu0 %v3070_v57  ;;  %v3152_v52 = vld [vmem:[#allocation2 + $0x668] ss:$16 sps:$4 sm:$0xff]  }
  0xb4   :  { %1804 = vmatprep.subr.bf16.mxu1 %v3067_v56  ;;  %v3155_v56 = vld [vmem:[#allocation2 + $0x428] ss:$16 sps:$4 sm:$0xff]  }
  0xb5   :  { %v3158_v57 = vld [vmem:[#allocation2 + $0x648] ss:$16 sps:$4 sm:$0xff]  }
  0xb6   :  { %1846 = vmatpush1.bf16.msra.mxu0 %v3068_v59  ;;  %v3166_v59 = vld [vmem:[#allocation2 + $0x62c] ss:$16 sps:$4 sm:$0xff]  }
  0xb7   :  { %1805 = vmatpush1.bf16.msra.mxu1 %v3065_v58  ;;  %1847 = vmatprep.subr.bf16.mxu0 %v3076_v61  ;;  %v3163_v58 = vld [vmem:[#allocation2 + $0x40c] ss:$16 sps:$4 sm:$0xff]   ;;  %v3164_v61 = vld [vmem:[#allocation2 + $0x628] ss:$16 sps:$4 sm:$0xff]  }
  0xb8   :  { %1806 = vmatprep.subr.bf16.mxu1 %v3073_v60  ;;  %v3161_v60 = vld [vmem:[#allocation2 + $0x408] ss:$16 sps:$4 sm:$0xff]  }
  0xba   :  { %1848 = vmatpush1.bf16.msra.mxu0 %v3074_v63  ;;  %v3172_v63 = vld [vmem:[#allocation2 + $0x60c] ss:$16 sps:$4 sm:$0xff]  }
  0xbb   :  { %1807 = vmatpush2.bf16.msra.mxu1 %v3071_v62  ;;  %1849 = vmatprep.subr.bf16.mxu0 %v3082_v1  ;;  %v3169_v62 = vld [vmem:[#allocation2 + $0x5ec] ss:$16 sps:$4 sm:$0xff]   ;;  %v3167_v1 = vld [vmem:[#allocation2 + $0x5e8] ss:$16 sps:$4 sm:$0xff]  }
  0xbc   :  { %1808 = vmatprep.subr.bf16.mxu1 %v3079_v0  ;;  %v328_v0 = vld [vmem:[#allocation2 + $0x7c8] sm:$0xff] }
  0xbe   :  { %1850 = vmatpush2.bf16.msra.mxu0 %v3080_v3  ;;  %v3175_v3 = vld [vmem:[#allocation2 + $0x5cc] ss:$16 sps:$4 sm:$0xff]  }
  0xbf   :  { %1809 = vmatpush2.bf16.msra.mxu1 %v3077_v2  ;;  %1851 = vmatprep.subr.bf16.mxu0 %v3088_v5  ;;  %v3170_v2 = vld [vmem:[#allocation2 + $0x608] ss:$16 sps:$4 sm:$0xff]   ;;  %v2700_v5 = vcombine.low %v328_v0, %v328_v0 }
  0xc0   :  { %1810 = vmatprep.subr.bf16.mxu1 %v3085_v4  ;;  %v2701_v4 = vcombine.high %v328_v0, %v328_v0 }
  0xc2   :  { %1852 = vmatpush2.bf16.msra.mxu0 %v3086_v7  ;;  %v1613_v7 = vsel %vm1605_vm1, %v2700_v5, 0 }
  0xc3   :  { %1811 = vmatpush2.bf16.msra.mxu1 %v3083_v6  ;;  %1853 = vmatprep.subr.bf16.mxu0 %v3094_v9  ;;  %v3173_v6 = vld [vmem:[#allocation2 + $0x5c8] ss:$16 sps:$4 sm:$0xff]   ;;  %v3183_v9 = vld [vmem:[#allocation2 + $0x7ac] ss:$16 sps:$4 sm:$0xff]  }
  0xc4   :  { %1812 = vmatprep.subr.bf16.mxu1 %v3091_v8  ;;  %v3180_v8 = vld [vmem:[#allocation2 + $0x5ac] ss:$16 sps:$4 sm:$0xff]  }
  0xc6   :  { %1854 = vmatpush2.bf16.msra.mxu0 %v3092_v11  ;;  %v3181_v11 = vld [vmem:[#allocation2 + $0x7a8] ss:$16 sps:$4 sm:$0xff]  }
  0xc7   :  { %1813 = vmatpush2.bf16.msra.mxu1 %v3089_v10  ;;  %1855 = vmatprep.subr.bf16.mxu0 %v3100_v15  ;;  %v3178_v10 = vld [vmem:[#allocation2 + $0x5a8] ss:$16 sps:$4 sm:$0xff]   ;;  %v3189_v15 = vld [vmem:[#allocation2 + $0x78c] ss:$16 sps:$4 sm:$0xff]  }
  0xc8   :  { %1814 = vmatprep.subr.bf16.mxu1 %v3097_v14  ;;  %v3186_v14 = vld [vmem:[#allocation2 + $0x58c] ss:$16 sps:$4 sm:$0xff]  }
  0xca   :  { %1856 = vmatpush2.bf16.msra.mxu0 %v3098_v17  ;;  %v3187_v17 = vld [vmem:[#allocation2 + $0x788] ss:$16 sps:$4 sm:$0xff]  }
  0xcb   :  { %1815 = vmatpush2.bf16.msra.mxu1 %v3095_v16  ;;  %1857 = vmatprep.subr.bf16.mxu0 %v3106_v19  ;;  %v3184_v16 = vld [vmem:[#allocation2 + $0x588] ss:$16 sps:$4 sm:$0xff]   ;;  %v3195_v19 = vld [vmem:[#allocation2 + $0x76c] ss:$16 sps:$4 sm:$0xff]  }
  0xcc   :  { %1816 = vmatprep.subr.bf16.mxu1 %v3103_v18  ;;  %v3192_v18 = vld [vmem:[#allocation2 + $0x56c] ss:$16 sps:$4 sm:$0xff]  }
  0xce   :  { %1858 = vmatpush2.bf16.msra.mxu0 %v3104_v21  ;;  %v3193_v21 = vld [vmem:[#allocation2 + $0x768] ss:$16 sps:$4 sm:$0xff]  }
  0xcf   :  { %1817 = vmatpush2.bf16.msra.mxu1 %v3101_v20  ;;  %1859 = vmatprep.subr.bf16.mxu0 %v3112_v23  ;;  %v3190_v20 = vld [vmem:[#allocation2 + $0x568] ss:$16 sps:$4 sm:$0xff]   ;;  %v3201_v23 = vld [vmem:[#allocation2 + $0x74c] ss:$16 sps:$4 sm:$0xff]  }
  0xd0   :  { %1818 = vmatprep.subr.bf16.mxu1 %v3109_v22  ;;  %v3198_v22 = vld [vmem:[#allocation2 + $0x54c] ss:$16 sps:$4 sm:$0xff]  }
  0xd2   :  { %1860 = vmatpush2.bf16.msra.mxu0 %v3110_v25  ;;  %v3199_v25 = vld [vmem:[#allocation2 + $0x748] ss:$16 sps:$4 sm:$0xff]  }
  0xd3   :  { %1819 = vmatpush2.bf16.msra.mxu1 %v3107_v24  ;;  %1861 = vmatprep.subr.bf16.mxu0 %v3118_v28  ;;  %v3196_v24 = vld [vmem:[#allocation2 + $0x548] ss:$16 sps:$4 sm:$0xff]   ;;  %v3207_v28 = vld [vmem:[#allocation2 + $0x72c] ss:$16 sps:$4 sm:$0xff]  }
  0xd4   :  { %1820 = vmatprep.subr.bf16.mxu1 %v3115_v27  ;;  %v3204_v27 = vld [vmem:[#allocation2 + $0x52c] ss:$16 sps:$4 sm:$0xff]  }
  0xd6   :  { %1862 = vmatpush2.bf16.msra.mxu0 %v3116_v30  ;;  %v3205_v30 = vld [vmem:[#allocation2 + $0x728] ss:$16 sps:$4 sm:$0xff]  }
  0xd7   :  { %1821 = vmatpush2.bf16.msra.mxu1 %v3113_v29  ;;  %1863 = vmatprep.subr.bf16.mxu0 %v3121_v32  ;;  %v3202_v29 = vld [vmem:[#allocation2 + $0x528] ss:$16 sps:$4 sm:$0xff]   ;;  %v3210_v32 = vld [vmem:[#allocation2 + $0x50c] ss:$16 sps:$4 sm:$0xff]  }
  0xd8   :  { %1876 = vmatprep.subr.bf16.mxu1 %v3124_v33  ;;  %v3213_v33 = vld [vmem:[#allocation2 + $0x70c] ss:$16 sps:$4 sm:$0xff]  }
  0xda   :  { %1823 = vmatmul.mubr.bf16.vlgmr.msra.gmra.mxu1 %v3382_v12  ;;  %1864 = vmatpush2.bf16.msra.mxu0 %v3119_v34  ;;  %v3140_v12 = vld [vmem:[#allocation2 + $0x6a8] ss:$16 sps:$4 sm:$0xff]  }
  0xdb   :  { %1877 = vmatpush1.bf16.msra.mxu1 %v3122_v35  ;;  %1919 = vmatprep.subr.bf16.mxu0 %v3130_v37  ;;  %v3208_v34 = vld [vmem:[#allocation2 + $0x508] ss:$16 sps:$4 sm:$0xff]  }
  0xdc   :  { %1878 = vmatprep.subr.bf16.mxu1 %v3127_v36  ;;  %1908 = vmatprep.mubr.bf16.mxu1 %v3404_v47  ;;  %v3146_v47 = vld [vmem:[#allocation2 + $0x688] ss:$16 sps:$4 sm:$0xff]  }
  0xdd   :  { %1866 = vmatmul.mubr.bf16.vlgmr.msra.gmra.mxu0 %v3384_v13  ;;  %v3143_v13 = vld [vmem:[#allocation2 + $0x468] ss:$16 sps:$4 sm:$0xff]  }
  0xde   :  { %1920 = vmatpush1.bf16.msra.mxu0 %v3128_v39  ;;  %2705 = vmatprep.mubr.msk.bf16.mxu0 %vm1601_vm0, %v3394_v40  ;;  %v3157_v40 = vld [vmem:[#allocation2 + $0x42c] ss:$16 sps:$4 sm:$0xff]   ;;  %v3211_v35 = vld [vmem:[#allocation2 + $0x708] ss:$16 sps:$4 sm:$0xff]   ;;  %v3217_v39 = vld [vmem:[#allocation4 + $0x30] sm:$0xff]  }
  0xdf   :  { %1879 = vmatpush1.bf16.msra.mxu1 %v3125_v38  ;;  %1921 = vmatprep.subr.bf16.mxu0 %v3136_v42  ;;  %v3214_v36 = vld [vmem:[#allocation4 + $0x78] sm:$0xff]   ;;  %v3216_v38 = vld [vmem:[#allocation4 + $0x70] sm:$0xff]   ;;  %v3219_v42 = vld [vmem:[#allocation4 + $0x28] sm:$0xff]  }
  0xe0   :  { %1880 = vmatprep.subr.bf16.mxu1 %v3133_v41  ;;  %v3215_v37 = vld [vmem:[#allocation4 + $0x38] sm:$0xff]   ;;  %v3218_v41 = vld [vmem:[#allocation4 + $0x68] sm:$0xff]  }
  0xe2   :  { %1922 = vmatpush1.bf16.msra.mxu0 %v3134_v53  ;;  %v3221_v53 = vld [vmem:[#allocation4 + $0x20] sm:$0xff]  }
  0xe3   :  { %1881 = vmatpush1.bf16.msra.mxu1 %v3131_v43  ;;  %1923 = vmatprep.subr.bf16.mxu0 %v3142_v45  ;;  %v3220_v43 = vld [vmem:[#allocation4 + $0x60] sm:$0xff]   ;;  %v3230_v45 = vld [vmem:[#allocation4 + $0xf8] sm:$0xff]  }
  0xe4   :  { %1882 = vmatprep.subr.bf16.mxu1 %v3139_v44  ;;  %v3222_v44 = vld [vmem:[#allocation4 + $0x58] sm:$0xff]  }
  0xe6   :  { %1924 = vmatpush1.bf16.msra.mxu0 %v3140_v12  ;;  %v3232_v12 = vld [vmem:[#allocation4 + $0xf0] sm:$0xff]  }
  0xe7   :  { %1883 = vmatpush1.bf16.msra.mxu1 %v3137_v46  ;;  %1925 = vmatprep.subr.bf16.mxu0 %v3148_v49  ;;  %v3231_v46 = vld [vmem:[#allocation4 + $0xb8] sm:$0xff]   ;;  %v3234_v49 = vld [vmem:[#allocation4 + $0xe8] sm:$0xff]  }
  0xe8   :  { %1884 = vmatprep.subr.bf16.mxu1 %v3145_v48  ;;  %v3223_v48 = vld [vmem:[#allocation4 + $0x18] sm:$0xff]  }
  0xea   :  { %1926 = vmatpush1.bf16.msra.mxu0 %v3146_v47  ;;  %v3226_v47 = vld [vmem:[#allocation4 + $0x48] sm:$0xff]  }
  0xeb   :  { %1885 = vmatpush1.bf16.msra.mxu1 %v3143_v13  ;;  %1927 = vmatprep.subr.bf16.mxu0 %v3154_v50  ;;  %v3225_v13 = vld [vmem:[#allocation4 + $0x10] sm:$0xff]   ;;  %v3236_v50 = vld [vmem:[#allocation4 + $0xe0] sm:$0xff]  }
  0xec   :  { %1886 = vmatprep.subr.bf16.mxu1 %v3151_v54  ;;  %v3235_v54 = vld [vmem:[#allocation4 + $0xa8] sm:$0xff]  }
  0xee   :  { %1928 = vmatpush1.bf16.msra.mxu0 %v3152_v52  ;;  %v3228_v52 = vld [vmem:[#allocation4 + $0x40] sm:$0xff]  }
  0xef   :  { %1887 = vmatpush1.bf16.msra.mxu1 %v3149_v51  ;;  %1929 = vmatprep.subr.bf16.mxu0 %v3160_v55  ;;  %v3227_v51 = vld [vmem:[#allocation4 + $0x8] sm:$0xff]   ;;  %v3229_v55 = vld [vmem:[#allocation4] sm:$0xff]  }
  0xf0   :  { %1888 = vmatprep.subr.bf16.mxu1 %v3157_v40  ;;  %v3237_v40 = vld [vmem:[#allocation4 + $0xa0] sm:$0xff]  }
  0xf2   :  { %1930 = vmatpush1.bf16.msra.mxu0 %v3158_v57 }
  0xf3   :  { %1889 = vmatpush1.bf16.msra.mxu1 %v3155_v56  ;;  %1931 = vmatprep.subr.bf16.mxu0 %v3166_v59  ;;  %v331_v56 = vlaneseq }
  0xf4   :  { %1890 = vmatprep.subr.bf16.mxu1 %v3163_v58 }
  0xf5   :  { %v3438_v58 = vshrl.u32 %v331_v56, 7 }
  0xf6   :  { %1932 = vmatpush1.bf16.msra.mxu0 %v3164_v61 }
  0xf7   :  { %1891 = vmatpush1.bf16.msra.mxu1 %v3161_v60  ;;  %1933 = vmatprep.subr.bf16.mxu0 %v3172_v63  ;;  %v337_v61 = vsub.s32 1, %v3438_v58 }
  0xf8   :  { %1892 = vmatprep.subr.bf16.mxu1 %v3169_v62  ;;  %v333_v62 = vsub.s32 0, %v3438_v58 }
  0xfa   :  { %1934 = vmatpush1.bf16.msra.mxu0 %v3170_v2 }
  0xfb   :  { %1893 = vmatpush2.bf16.msra.mxu1 %v3167_v1  ;;  %2704 = vmatprep.subr.msk.bf16.mxu0 %vm1605_vm1, %v2701_v4  ;;  %v3445_v1 = vld [vmem:[%s3497_s2] sm:$0xf] }
  0xfc   :  { %1894 = vmatprep.subr.bf16.mxu1 %v3175_v3  ;;  %v338_v2 = vrot.slane %v3445_v1, %v337_v61  ;;  %v334_v3 = vrot.slane %v3445_v1, %v333_v62 }
  0xfe   :  { %1938 = vmatpush2.bf16.msra.mxu0 %v1613_v7  ;;  %v3239_v7 = vld [vmem:[#allocation4 + $0x98] sm:$0xff]  }
  0xff   :  { %1895 = vmatpush2.bf16.msra.mxu1 %v3173_v6  ;;  %1939 = vmatprep.subr.bf16.mxu0 %v3183_v9  ;;  %v3238_v6 = vld [vmem:[#allocation4 + $0xd8] sm:$0xff]  }
 0x100   :  { %1896 = vmatprep.subr.bf16.mxu1 %v3180_v8 }
 0x102   :  { %1940 = vmatpush2.bf16.msra.mxu0 %v3181_v11 }
 0x103   :  { %1897 = vmatpush2.bf16.msra.mxu1 %v3178_v10  ;;  %1941 = vmatprep.subr.bf16.mxu0 %v3189_v15 }
 0x104   :  { %1898 = vmatprep.subr.bf16.mxu1 %v3186_v14  ;;  %v3240_v14 = vld [vmem:[#allocation4 + $0xd0] sm:$0xff]  }
 0x106   :  { %1942 = vmatpush2.bf16.msra.mxu0 %v3187_v17 }
 0x107   :  { %1899 = vmatpush2.bf16.msra.mxu1 %v3184_v16  ;;  %1943 = vmatprep.subr.bf16.mxu0 %v3195_v19  ;;  %v3241_v16 = vld [vmem:[#allocation4 + $0x90] sm:$0xff]  }
 0x108   :  { %1900 = vmatprep.subr.bf16.mxu1 %v3192_v18 }
 0x10a   :  { %1944 = vmatpush2.bf16.msra.mxu0 %v3193_v21 }
 0x10b   :  { %1901 = vmatpush2.bf16.msra.mxu1 %v3190_v20  ;;  %1945 = vmatprep.subr.bf16.mxu0 %v3201_v23  ;;  %v3242_v23 = vld [vmem:[#allocation4 + $0xc8] sm:$0xff]  }
 0x10c   :  { %1902 = vmatprep.subr.bf16.mxu1 %v3198_v22 }
 0x10e   :  { %1946 = vmatpush2.bf16.msra.mxu0 %v3199_v25 }
 0x10f   :  { %1903 = vmatpush2.bf16.msra.mxu1 %v3196_v24  ;;  %1947 = vmatprep.subr.bf16.mxu0 %v3207_v28 }
 0x110   :  { %1904 = vmatprep.subr.bf16.mxu1 %v3204_v27  ;;  %v3243_v27 = vld [vmem:[#allocation4 + $0x88] sm:$0xff]  }
 0x112   :  { %1948 = vmatpush2.bf16.msra.mxu0 %v3205_v30 }
 0x113   :  { %1905 = vmatpush2.bf16.msra.mxu1 %v3202_v29  ;;  %1949 = vmatprep.subr.bf16.mxu0 %v3213_v33 }
 0x114   :  { %1906 = vmatprep.subr.bf16.mxu1 %v3210_v32 }
 0x116   :  { %1950 = vmatpush2.bf16.msra.mxu0 %v3211_v35  ;;  %v3244_v35 = vld [vmem:[#allocation4 + $0xc0] sm:$0xff]  }
 0x117   :  { %1907 = vmatpush2.bf16.msra.mxu1 %v3208_v34  ;;  %2757 = vmatprep.subr.bf16.mxu0 %v3214_v36 }
 0x118   :  { %2779 = vmatprep.subr.bf16.mxu1 %v3230_v45 }
 0x119   :  { %1952 = vmatmul.mubr.bf16.vlgmr.msra.gmra.mxu0 %v3415_v26  ;;  %v3224_v26 = vld [vmem:[#allocation4 + $0x50] sm:$0xff]  }
 0x11a   :  { %1909 = vmatmul.mubr.bf16.vlgmr.msra.gmra.mxu1 %v3424_v31  ;;  %2758 = vmatpush3.bf16.msra.mxu0 %v3215_v37  ;;  %v3233_v31 = vld [vmem:[#allocation4 + $0xb0] sm:$0xff]  }
 0x11b   :  { %2759 = vmatprep.subr.bf16.mxu0 %v3216_v38  ;;  %2780 = vmatpush3.bf16.msra.mxu1 %v3231_v46 }
 0x11c   :  { %2781 = vmatprep.subr.bf16.mxu1 %v3232_v12 }
 0x11d   :  { %v1652_v59 = vpop.f32.mrf.mxu0 }
 0x11e   :  { %2760 = vmatpush3.bf16.msra.mxu0 %v3217_v39  ;;  %v1695_v57 = vpop.f32.mrf.mxu1  ;;  %v1653_v10 = vadd.f32 %v1652_v59, %v334_v3  ;;  %v3245_v39 = vld [vmem:[#allocation4 + $0x80] sm:$0xff]  }
 0x11f   :  { %2761 = vmatprep.subr.bf16.mxu0 %v3218_v41  ;;  %2782 = vmatpush3.bf16.msra.mxu1 %v3233_v31  ;;  %v1654_v63 = vpop.f32.mrf.mxu0  ;;  %v3304_v31 = vmov 0.0  }
 0x120   :  { %2783 = vmatprep.subr.bf16.mxu1 %v3234_v49  ;;  %v1697_v60 = vpop.f32.mrf.mxu1  ;;  %v1655_v9 = vadd.f32 %v1654_v63, %v338_v2  ;;  %v1696_v21 = vadd.f32 %v1695_v57, %v1653_v10  ;;  %v3247_v49 = vld [vmem:[%s3500_s5 + $0x30] sm:$0xff]  }
 0x121   :  { %v1656_v4 = vpop.f32.mrf.mxu0 }
 0x122   :  { %2762 = vmatpush3.bf16.msra.mxu0 %v3219_v42  ;;  %v1699_v0 = vpop.f32.mrf.mxu1  ;;  %v1657_v15 = vadd.f32 %v1656_v4, %v334_v3  ;;  %v1698_v19 = vadd.f32 %v1697_v60, %v1655_v9 }
 0x123   :  { %2763 = vmatprep.subr.bf16.mxu0 %v3220_v43  ;;  %2784 = vmatpush3.bf16.msra.mxu1 %v3235_v54  ;;  %v1658_v11 = vpop.f32.mrf.mxu0 }
 0x124   :  { %2785 = vmatprep.subr.bf16.mxu1 %v3236_v50  ;;  %v1701_v5 = vpop.f32.mrf.mxu1  ;;  %v1659_v20 = vadd.f32 %v1658_v11, %v338_v2  ;;  %v1700_v24 = vadd.f32 %v1699_v0, %v1657_v15 }
 0x126   :  { %2764 = vmatpush3.bf16.msra.mxu0 %v3221_v53  ;;  %v1702_v32 = vadd.f32 %v1701_v5, %v1659_v20 }
 0x127   :  { %2765 = vmatprep.subr.bf16.mxu0 %v3222_v44  ;;  %2786 = vmatpush3.bf16.msra.mxu1 %v3237_v40 }
 0x128   :  { %2787 = vmatprep.subr.bf16.mxu1 %v3238_v6 }
 0x12a   :  { %2766 = vmatpush3.bf16.msra.mxu0 %v3223_v48 }
 0x12b   :  { %2767 = vmatprep.subr.bf16.mxu0 %v3224_v26  ;;  %2788 = vmatpush3.bf16.msra.mxu1 %v3239_v7  ;;  %v3246_v26 = vld [vmem:[%s3500_s5 + $0x38] sm:$0xff]  }
 0x12c   :  { %2789 = vmatprep.subr.bf16.mxu1 %v3240_v14 }
 0x12e   :  { %2768 = vmatpush3.bf16.msra.mxu0 %v3225_v13  ;;  %v3248_v13 = vld [vmem:[%s3500_s5 + $0x28] sm:$0xff]  }
 0x12f   :  { %2769 = vmatprep.subr.bf16.mxu0 %v3226_v47  ;;  %2790 = vmatpush3.bf16.msra.mxu1 %v3241_v16  ;;  %v3249_v47 = vld [vmem:[%s3500_s5 + $0x20] sm:$0xff]  }
 0x130   :  { %2791 = vmatprep.subr.bf16.mxu1 %v3242_v23 }
 0x132   :  { %2770 = vmatpush3.bf16.msra.mxu0 %v3227_v51  ;;  %v341_v51 = vsub.s32 2, %v3438_v58 }
 0x133   :  { %2771 = vmatprep.subr.bf16.mxu0 %v3228_v52  ;;  %2792 = vmatpush3.bf16.msra.mxu1 %v3243_v27 }
 0x134   :  { %2793 = vmatprep.subr.bf16.mxu1 %v3244_v35  ;;  %v342_v56 = vrot.slane %v3445_v1, %v341_v51  ;;  %v3253_v35 = vld [vmem:[%s3500_s5] sm:$0xff]  }
 0x136   :  { %2772 = vmatpush3.bf16.msra.mxu0 %v3229_v55  ;;  %v345_v55 = vsub.s32 3, %v3438_v58 }
 0x137   :  { %2794 = vmatpush3.bf16.msra.mxu1 %v3245_v39  ;;  %2810 = vmatprep.subr.bf16.mxu0 %v3304_v31 }
 0x138   :  { %v346_v60 = vrot.slane %v3445_v1, %v345_v55 }
 0x15a   :  { %v1781_v8 = vpop.f32.mrf.mxu1 }
 0x15c   :  { %v1783_v17 = vpop.f32.mrf.mxu1 }
 0x15d   :  { %v1738_v18 = vpop.f32.mrf.mxu0 }
 0x15e   :  { %v1739_v28 = vadd.f32 %v1738_v18, %v1696_v21  ;;  %v1785_v29 = vpop.f32.mrf.mxu1 }
 0x15f   :  { %v1740_v22 = vpop.f32.mrf.mxu0 }
 0x160   :  { %v1741_v25 = vadd.f32 %v1740_v22, %v1698_v19  ;;  %v1782_v41 = vadd.f32 %v1781_v8, %v1739_v28  ;;  %v1787_v42 = vpop.f32.mrf.mxu1 }
 0x161   :  { %v1742_v30 = vpop.f32.mrf.mxu0 }
 0x162   :  { %v1743_v33 = vadd.f32 %v1742_v30, %v1700_v24  ;;  %v1784_v36 = vadd.f32 %v1783_v17, %v1741_v25  ;;  %v1962_v46 = vmax.f32 %v1782_v41, 0.0 }
 0x163   :  { %v1744_v34 = vpop.f32.mrf.mxu0 }
 0x164   :  { %v1786_v37 = vadd.f32 %v1785_v29, %v1743_v33  ;;  %v1745_v38 = vadd.f32 %v1744_v34, %v1702_v32  ;;  %v1963_v44 = vmax.f32 %v1784_v36, 0.0  ;;  %v3250_v32 = vld [vmem:[%s3500_s5 + $0x18] sm:$0xff]   ;;  %v3251_v33 = vld [vmem:[%s3500_s5 + $0x10] sm:$0xff]   ;;  %v3252_v34 = vld [vmem:[%s3500_s5 + $0x8] sm:$0xff]  }
 0x166   :  { %v1788_v43 = vadd.f32 %v1787_v42, %v1745_v38  ;;  %v1966_v53 = vmax.f32 %v1786_v37, 0.0 }
 0x168   :  { %v1967_v45 = vmax.f32 %v1788_v43, 0.0  ;;  %v1970_v48 = vpack.c.bf16 %v1966_v53, %v1962_v46  ;;  %v2706_v43 = vld [vmem:[%s3499_s4] ss:$0 sm:$0xff] }
 0x16a   :  { %v1971_v12 = vpack.c.bf16 %v1967_v45, %v1963_v44 }
 0x16c   :  { %2269 = vmatprep.mubr.bf16.mxu0 %v1971_v12 }
 0x16d   :  { %2270 = vmatmul.mubr.bf16.vlgmr.msra.gmra.mxu0 %v1970_v48 }
 0x16e   :  { %2811 = vmatpush3.bf16.msra.mxu0 %v3246_v26  ;;  %2826 = vmatprep.mubr.msk.bf16.mxu0 %vm3305_vm2, %v3304_v31 }
 0x16f   :  { %2812 = vmatprep.subr.bf16.mxu0 %v3304_v31 }
 0x172   :  { %2813 = vmatpush3.bf16.msra.mxu0 %v3247_v49 }
 0x173   :  { %2814 = vmatprep.subr.bf16.mxu0 %v3304_v31 }
 0x176   :  { %2815 = vmatpush3.bf16.msra.mxu0 %v3248_v13 }
 0x177   :  { %2816 = vmatprep.subr.bf16.mxu0 %v3304_v31 }
 0x17a   :  { %2817 = vmatpush3.bf16.msra.mxu0 %v3249_v47 }
 0x17b   :  { %2818 = vmatprep.subr.bf16.mxu0 %v3304_v31 }
 0x17e   :  { %2819 = vmatpush3.bf16.msra.mxu0 %v3250_v32 }
 0x17f   :  { %2820 = vmatprep.subr.bf16.mxu0 %v3304_v31 }
 0x182   :  { %2821 = vmatpush3.bf16.msra.mxu0 %v3251_v33 }
 0x183   :  { %2822 = vmatprep.subr.bf16.mxu0 %v3304_v31 }
 0x186   :  { %2823 = vmatpush3.bf16.msra.mxu0 %v3252_v34 }
 0x187   :  { %2824 = vmatprep.subr.bf16.mxu0 %v3304_v31 }
 0x18a   :  { %2825 = vmatpush3.bf16.msra.mxu0 %v3253_v35 }
 0x19a   :  { %v1824_v54 = vpop.f32.mrf.mxu1 }
 0x19b   :  { %v1825_v61 = vadd.f32 %v1824_v54, %v342_v56 }
 0x19c   :  { %v1826_v52 = vpop.f32.mrf.mxu1 }
 0x19d   :  { %v1867_v50 = vpop.f32.mrf.mxu0  ;;  %v1827_v0 = vadd.f32 %v1826_v52, %v346_v60  ;;  %v2739_v52 = vld [vmem:[%s3501_s6] ss:$0 sm:$0xff] }
 0x19e   :  { %v1828_v57 = vpop.f32.mrf.mxu1  ;;  %v1868_v6 = vadd.f32 %v1867_v50, %v1825_v61 }
 0x19f   :  { %v1869_v40 = vpop.f32.mrf.mxu0  ;;  %v1829_v4 = vadd.f32 %v1828_v57, %v342_v56 }
 0x1a0   :  { %v1830_v62 = vpop.f32.mrf.mxu1  ;;  %v1870_v5 = vadd.f32 %v1869_v40, %v1827_v0 }
 0x1a1   :  { %v1871_v59 = vpop.f32.mrf.mxu0  ;;  %v1831_v9 = vadd.f32 %v1830_v62, %v346_v60 }
 0x1a2   :  { %v1872_v10 = vadd.f32 %v1871_v59, %v1829_v4 }
 0x1a3   :  { %v1873_v63 = vpop.f32.mrf.mxu0 }
 0x1a4   :  { %v1874_v16 = vadd.f32 %v1873_v63, %v1831_v9 }
 0x1d9   :  { %v1953_v3 = vpop.f32.mrf.mxu0 }
 0x1da   :  { %v1910_v2 = vpop.f32.mrf.mxu1 }
 0x1db   :  { %v1955_v8 = vpop.f32.mrf.mxu0  ;;  %v1911_v11 = vadd.f32 %v1910_v2, %v1868_v6 }
 0x1dc   :  { %v1912_v7 = vpop.f32.mrf.mxu1 }
 0x1dd   :  { %v1913_v58 = vadd.f32 %v1912_v7, %v1870_v5  ;;  %v1957_v15 = vpop.f32.mrf.mxu0  ;;  %v1954_v21 = vadd.f32 %v1953_v3, %v1911_v11 }
 0x1de   :  { %v1914_v14 = vpop.f32.mrf.mxu1 }
 0x1df   :  { %v1915_v17 = vadd.f32 %v1914_v14, %v1872_v10  ;;  %v1956_v18 = vadd.f32 %v1955_v8, %v1913_v58  ;;  %v1959_v22 = vpop.f32.mrf.mxu0  ;;  %v1964_v28 = vmax.f32 %v1954_v21, 0.0 }
 0x1e0   :  { %v1916_v1 = vpop.f32.mrf.mxu1 }
 0x1e1   :  { %v1958_v19 = vadd.f32 %v1957_v15, %v1915_v17  ;;  %v1917_v20 = vadd.f32 %v1916_v1, %v1874_v16  ;;  %v1965_v25 = vmax.f32 %v1956_v18, 0.0 }
 0x1e3   :  { %v1960_v23 = vadd.f32 %v1959_v22, %v1917_v20  ;;  %v1968_v24 = vmax.f32 %v1958_v19, 0.0 }
 0x1e5   :  { %v1969_v27 = vmax.f32 %v1960_v23, 0.0  ;;  %v1972_v30 = vpack.c.bf16 %v1968_v24, %v1964_v28 }
 0x1e7   :  { %v1973_v29 = vpack.c.bf16 %v1969_v27, %v1965_v25 }
 0x1e9   :  { %2310 = vmatprep.mubr.bf16.mxu1 %v1973_v29 }
 0x1ea   :  { %2311 = vmatmul.mubr.bf16.vlgmr.msra.gmra.mxu1 %v1972_v30 }
 0x22d   :  { %v2773_v36 = vpop.f32.mrf.mxu0 }
 0x22f   :  { %v2774_v37 = vpop.f32.mrf.mxu0 }
 0x230   :  { %v2775_v42 = vadd.f32 %v2774_v37, %v2773_v36 }
 0x231   :  { %v2776_v38 = vpop.f32.mrf.mxu0 }
 0x232   :  { %v2272_v12 = vadd.f32 %v2775_v42, %v2706_v43 }
 0x233   :  { %v2777_v39 = vpop.f32.mrf.mxu0 }
 0x234   :  { %v2778_v44 = vadd.f32 %v2777_v39, %v2776_v38 }
 0x236   :  { %v2275_v26 = vadd.f32 %v2778_v44, %v2706_v43 }
 0x2aa   :  { %v2795_v41 = vpop.f32.mrf.mxu1 }
 0x2ac   :  { %v2796_v53 = vpop.f32.mrf.mxu1 }
 0x2ad   :  { %v2797_v45 = vadd.f32 %v2796_v53, %v2795_v41 }
 0x2ae   :  { %v2798_v46 = vpop.f32.mrf.mxu1 }
 0x2af   :  { %v2313_v49 = vadd.f32 %v2797_v45, %v2272_v12 }
 0x2b0   :  { %v2799_v48 = vpop.f32.mrf.mxu1 }
 0x2b1   :  { %v2800_v13 = vadd.f32 %v2799_v48, %v2798_v46  ;;  %v2319_v47 = vmax.f32 %v2313_v49, 0.0 }
 0x2b3   :  { %v2316_v31 = vadd.f32 %v2800_v13, %v2275_v26 }
 0x2b5   :  { %v2320_v54 = vmax.f32 %v2316_v31, 0.0 }
 0x2b7   :  { %v2321_v50 = vpack.c.bf16 %v2320_v54, %v2319_v47 }
 0x2b9   :  { %2827 = vmatmul.mubr.bf16.vlgmr.msra.gmra.mxu0 %v2321_v50 }
 0x379   :  { %v2427_v51 = vpop.f32.mrf.mxu0 }
 0x37a   :  { %v2428_v56 = vadd.f32 %v2739_v52, %v2427_v51 }
 0x37b   :  { %v2828_v40 = vpop.f32.mrf.mxu0 }
 0x37d   :  { %v2430_v55 = vpop.f32.mrf.mxu0 }
 0x37e   :  { %v2431_v57 = vadd.f32 %v2739_v52, %v2430_v55 }
 0x37f   :  { %v2829_v59 = vpop.f32.mrf.mxu0 }
 0x380   :  { %v2755_v60 = vpack.c.bf16 %v2431_v57, %v2428_v56 }
 0x382   :  { %2756 = vst [vmem:[%s3502_s7] sm:$0xff] %v2755_v60  }
 0x383   :  { %2448 = vsyncpa [#allocation3], 1 }
 0x384   :  { %2449 = vsyncpa [#allocation5], 1 }

</bundles_post_ra>
